<compile_context>
chip_gen: v7x
topology: tpu7x:2x2x1
jax: 0.10.0
libtpu: 0.0.40
codegen_flags: <defaults>
</compile_context>

<pallas_src>
import functools

import jax
import jax.numpy as jnp
from jax import lax
from jax.experimental import pallas as pl
from jax.experimental.pallas import tpu as pltpu

# MXU operand dtype for the two 3x3 convs (products exact in f32, accumulation f32).
MM_DTYPE = jnp.bfloat16


def _banded_conv_weights(w_hwio, spatial_w, dtype):
    """3x3 'same' conv as three block-banded matrices, one per kernel-height tap.

    B_kh[w'*Cin + ci, w*Cout + co] = w_hwio[kh, (w'-w)+1, ci, co]  if |w'-w| <= 1 else 0
    so that  out[n, h] = sum_kh  x_row[n, h + (kh-1)] @ B_kh   (x_row = (W*Cin,) lane-dense),
    with W-edge zero padding encoded by the band structure.
    """
    _, _, cin, cout = w_hwio.shape
    mats = []
    for kh in range(3):
        acc = jnp.zeros((spatial_w, cin, spatial_w, cout), jnp.float32)
        for kw, dw in enumerate((-1, 0, 1)):
            shift = jnp.eye(spatial_w, dtype=jnp.float32, k=-dw)  # shift[w+dw, w] = 1
            acc = acc + jnp.einsum("pw,io->piwo", shift,
                                   w_hwio[kh, kw].astype(jnp.float32))
        mats.append(acc.reshape(spatial_w * cin, spatial_w * cout).astype(dtype))
    return mats


def _banded_conv(hm, b_m1, b_0, b_p1):
    """hm: (NB, H, W*Cin) in MM_DTYPE.  Returns (NB*H, W*Cout) f32."""
    NB, H, WC = hm.shape
    f32 = jnp.float32
    zrow = jnp.zeros((NB, 1, WC), hm.dtype)
    h_dn = jnp.concatenate([zrow, hm[:, :H - 1]], axis=1)  # row h holds x[h-1]  (kh=0)
    h_up = jnp.concatenate([hm[:, 1:], zrow], axis=1)      # row h holds x[h+1]  (kh=2)
    M = NB * H
    acc = jnp.dot(h_dn.reshape(M, WC), b_m1, preferred_element_type=f32)
    acc = acc + jnp.dot(hm.reshape(M, WC), b_0, preferred_element_type=f32)
    acc = acc + jnp.dot(h_up.reshape(M, WC), b_p1, preferred_element_type=f32)
    return acc


def se_basic_block_kernel(NB, H, W, Cin, Cout,
                          x_ref,
                          s1_ref, b1_ref, b1m_ref, b10_ref, b1p_ref,
                          s2_ref, b2_ref, b2m_ref, b20_ref, b2p_ref,
                          s3_ref, b3_ref,
                          pool_ref, tilem_ref, wfc1_ref, wfc2_ref,
                          o_ref):
    f32 = jnp.float32
    x = x_ref[...]                                            # (NB, H, W*Cin) f32, lane-dense

    # --- bn1 (folded per-channel affine, channel vector tiled along W in the wrapper) ---
    h1 = x * s1_ref[...] + b1_ref[...]

    # --- conv1: 3 banded matmuls, K = W*Cin, bf16 operands, f32 accumulation ---
    acc1 = _banded_conv(h1.astype(MM_DTYPE),
                        b1m_ref[...], b10_ref[...], b1p_ref[...])   # (NB*H, W*Cout)

    # --- bn2 + relu (Dropout2d is identity at inference) ---
    h2 = jnp.maximum(acc1 * s2_ref[...] + b2_ref[...], 0.0)

    # --- conv2 ---
    acc2 = _banded_conv(h2.astype(MM_DTYPE).reshape(NB, H, W * Cout),
                        b2m_ref[...], b20_ref[...], b2p_ref[...])   # (NB*H, W*Cout)

    # --- bn3 ---
    h3 = (acc2 * s3_ref[...] + b3_ref[...]).reshape(NB, H, W * Cout)

    # --- SE: global avg pool (H = sublane reduce, W = pool matmul) -> fc -> relu -> fc -> sigmoid ---
    yh = jnp.sum(h3, axis=1)                                        # (NB, W*Cout)
    y = jnp.dot(yh, pool_ref[...], preferred_element_type=f32)      # (NB, Cout) == mean over H,W
    t1 = jnp.maximum(jnp.sum(y[:, :, None] * wfc1_ref[...][None, :, :], axis=1), 0.0)  # (NB, Cr)
    se = jax.nn.sigmoid(jnp.sum(t1[:, :, None] * wfc2_ref[...][None, :, :], axis=1))   # (NB, Cout)
    se_t = jnp.dot(se, tilem_ref[...], preferred_element_type=f32)  # (NB, W*Cout)

    # --- channel scale + identity residual (downsample=None => inplanes == planes); lane-dense store ---
    o_ref[...] = h3 * se_t[:, None, :] + x


def _default_blocks(n):
    """2 grid steps only on dual-TensorCore chips (v7x); 1 step on single-TC v5e/v6e."""
    try:
        kind = jax.devices()[0].device_kind.lower()
    except Exception:
        kind = ""
    if "v7" in kind and n >= 2 and n % 2 == 0:
        return 2
    return 1


def se_basic_block(x_nchw, p, *, blocks=None):
    """Eval-mode SEBasicBlock forward. x_nchw: (N, C, H, W) like the PyTorch module."""
    x_nhwc = jnp.transpose(x_nchw, (0, 2, 3, 1)).astype(jnp.float32)  # NCHW -> NHWC
    N, H, W, Cin = x_nhwc.shape
    Cout = p["w1"].shape[-1]
    Cr = p["wfc1"].shape[-1]
    assert Cin == Cout and p["w2"].shape[-2] == Cout  # downsample=None => inplanes == planes

    if blocks is None:
        blocks = _default_blocks(N)
    assert N % blocks == 0, (N, blocks)
    NB = N // blocks
    # VMEM guard: live temporaries per step ~ a few copies of NB*H*W*C (f32/bf16) plus
    # 6 * (W*C)^2 bf16 band weights.  If N/H/W grow, add grid steps (smaller NB) before
    # touching vmem_limit_bytes — v7x has only 64 MiB physical / 32 MiB scoped default.

    f32 = jnp.float32
    x_flat = x_nhwc.reshape(N, H, W * Cin)  # lane-dense view (free contiguous reshape)

    def tile_w(v):  # per-channel vector -> (1, W*C) lane-dense
        return jnp.tile(v.astype(f32).reshape(1, -1), (1, W))

    s1t, b1t = tile_w(p["s1"]), tile_w(p["b1"])
    s2t, b2t = tile_w(p["s2"]), tile_w(p["b2"])
    s3t, b3t = tile_w(p["s3"]), tile_w(p["b3"])

    b1m, b10, b1p = _banded_conv_weights(p["w1"], W, MM_DTYPE)   # (W*Cin, W*Cout) each
    b2m, b20, b2p = _banded_conv_weights(p["w2"], W, MM_DTYPE)   # (W*Cout, W*Cout) each

    eye = jnp.eye(Cout, dtype=f32)
    pool = jnp.tile(eye, (W, 1)) / float(H * W)   # (W*Cout, Cout): mean over all H*W positions
    tilem = jnp.tile(eye, (1, W))                 # (Cout, W*Cout): broadcast channel vec along W

    kernel = functools.partial(se_basic_block_kernel, NB, H, W, Cin, Cout)

    def rep2(a):
        return pl.BlockSpec(a.shape, lambda b: (0, 0))

    out_flat = pl.pallas_call(
        kernel,
        out_shape=jax.ShapeDtypeStruct((N, H, W * Cout), jnp.float32),
        grid=(blocks,),
        in_specs=[
            pl.BlockSpec((NB, H, W * Cin), lambda b: (b, 0, 0)),
            rep2(s1t), rep2(b1t), rep2(b1m), rep2(b10), rep2(b1p),
            rep2(s2t), rep2(b2t), rep2(b2m), rep2(b20), rep2(b2p),
            rep2(s3t), rep2(b3t),
            rep2(pool), rep2(tilem),
            rep2(p["wfc1"]), rep2(p["wfc2"]),
        ],
        out_specs=pl.BlockSpec((NB, H, W * Cout), lambda b: (b, 0, 0)),
        compiler_params=pltpu.CompilerParams(dimension_semantics=("parallel",)),
    )(x_flat, s1t, b1t, b1m, b10, b1p, s2t, b2t, b2m, b20, b2p, s3t, b3t,
      pool, tilem, p["wfc1"].astype(f32), p["wfc2"].astype(f32))

    out_nhwc = out_flat.reshape(N, H, W, Cout)
    return jnp.transpose(out_nhwc, (0, 3, 1, 2))  # NHWC -> NCHW


def ref_forward(x_nchw, p, conv_dtype=jnp.float32):
    """Pure-JAX reference of the eval-mode forward pass (conv operands cast to conv_dtype)."""
    x = jnp.transpose(x_nchw, (0, 2, 3, 1)).astype(jnp.float32)

    def bn(v, s, b):
        return v * s.reshape(1, 1, 1, -1) + b.reshape(1, 1, 1, -1)

    def conv(v, w):
        return lax.conv_general_dilated(
            v.astype(conv_dtype), w.astype(conv_dtype), (1, 1), "SAME",
            dimension_numbers=("NHWC", "HWIO", "NHWC"),
            preferred_element_type=jnp.float32)

    h = bn(x, p["s1"], p["b1"])
    h = conv(h, p["w1"])
    h = jnp.maximum(bn(h, p["s2"], p["b2"]), 0.0)
    h = conv(h, p["w2"])
    h = bn(h, p["s3"], p["b3"])
    y = jnp.mean(h, axis=(1, 2))                      # (N, C)
    t = jnp.maximum(y @ p["wfc1"], 0.0)
    s = jax.nn.sigmoid(t @ p["wfc2"])
    out = h * s[:, None, None, :] + x
    return jnp.transpose(out, (0, 3, 1, 2))


if __name__ == "__main__":
    key = jax.random.PRNGKey(0)
    N, Cin, H, W = 4, 16, 16, 16
    Cout = 16               # planes (== inplanes, since downsample=None)
    reduction = 4
    Cr = Cout // reduction
    eps = 1e-5

    ks = jax.random.split(key, 16)
    x = jax.random.normal(ks[0], (N, Cin, H, W), jnp.float32)   # PyTorch NCHW input

    def bn_affine(kg, kb, km, kv, C):
        gamma = 1.0 + 0.1 * jax.random.normal(kg, (C,), jnp.float32)
        beta = 0.1 * jax.random.normal(kb, (C,), jnp.float32)
        mean = 0.1 * jax.random.normal(km, (C,), jnp.float32)
        var = jax.random.uniform(kv, (C,), jnp.float32, minval=0.5, maxval=1.5)
        scale = gamma / jnp.sqrt(var + eps)
        bias = beta - mean * scale
        return scale, bias

    s1, b1 = bn_affine(ks[1], ks[2], ks[3], ks[4], Cin)
    s2, b2 = bn_affine(ks[5], ks[6], ks[7], ks[8], Cout)
    s3, b3 = bn_affine(ks[9], ks[10], ks[11], ks[12], Cout)

    w1 = 0.1 * jax.random.normal(ks[13], (3, 3, Cin, Cout), jnp.float32)    # conv1 (HWIO)
    w2 = 0.1 * jax.random.normal(ks[14], (3, 3, Cout, Cout), jnp.float32)   # conv2 (HWIO)
    kf1, kf2 = jax.random.split(ks[15])
    wfc1 = 0.2 * jax.random.normal(kf1, (Cout, Cr), jnp.float32)   # SE fc1 (transposed torch weight)
    wfc2 = 0.2 * jax.random.normal(kf2, (Cr, Cout), jnp.float32)   # SE fc2 (transposed torch weight)

    params = dict(s1=s1, b1=b1, s2=s2, b2=b2, s3=s3, b3=b3,
                  w1=w1, w2=w2, wfc1=wfc1, wfc2=wfc2)

    out = se_basic_block(x, params)
    out = jax.block_until_ready(out)

    # Reference also casts conv operands to MM_DTYPE so the comparison stays meaningful
    # (kernel and reference share the bf16 operand rounding; only f32 summation order differs).
    ref = ref_forward(x, params, conv_dtype=MM_DTYPE)
    assert out.shape == (N, Cout, H, W), out.shape
    err = float(jnp.max(jnp.abs(out - ref)))
    assert jnp.allclose(out, ref, atol=5e-3, rtol=5e-3), err
    print("KERNEL_OK")
</pallas_src>

<mosaic_0001>
module attributes {stable_mosaic.version = 11 : i64} {
  func.func @se_basic_block_kernel(%arg0: i32, %arg1: memref<4x16x256xf32, #tpu.memory_space<vmem>>, %arg2: memref<1x256xf32, #tpu.memory_space<vmem>>, %arg3: memref<1x256xf32, #tpu.memory_space<vmem>>, %arg4: memref<256x256xbf16, #tpu.memory_space<vmem>>, %arg5: memref<256x256xbf16, #tpu.memory_space<vmem>>, %arg6: memref<256x256xbf16, #tpu.memory_space<vmem>>, %arg7: memref<1x256xf32, #tpu.memory_space<vmem>>, %arg8: memref<1x256xf32, #tpu.memory_space<vmem>>, %arg9: memref<256x256xbf16, #tpu.memory_space<vmem>>, %arg10: memref<256x256xbf16, #tpu.memory_space<vmem>>, %arg11: memref<256x256xbf16, #tpu.memory_space<vmem>>, %arg12: memref<1x256xf32, #tpu.memory_space<vmem>>, %arg13: memref<1x256xf32, #tpu.memory_space<vmem>>, %arg14: memref<256x16xf32, #tpu.memory_space<vmem>>, %arg15: memref<16x256xf32, #tpu.memory_space<vmem>>, %arg16: memref<16x4xf32, #tpu.memory_space<vmem>>, %arg17: memref<4x16xf32, #tpu.memory_space<vmem>>, %arg18: memref<4x16x256xf32, #tpu.memory_space<vmem>>) attributes {dimension_semantics = [#tpu.dimension_semantics<parallel>], iteration_bounds = array<i64: 1>, scalar_prefetch = 0 : i64, scratch_operands = 0 : i64, tpu.core_type = #tpu.core_type<tc>, window_params = [{transform_indices = @transform_0, window_bounds = array<i64: 4, 16, 256>}, {pipeline_mode = #tpu.pipeline_mode<synchronous>, transform_indices = @transform_1, window_bounds = array<i64: 1, 256>}, {pipeline_mode = #tpu.pipeline_mode<synchronous>, transform_indices = @transform_2, window_bounds = array<i64: 1, 256>}, {pipeline_mode = #tpu.pipeline_mode<synchronous>, transform_indices = @transform_3, window_bounds = array<i64: 256, 256>}, {pipeline_mode = #tpu.pipeline_mode<synchronous>, transform_indices = @transform_4, window_bounds = array<i64: 256, 256>}, {pipeline_mode = #tpu.pipeline_mode<synchronous>, transform_indices = @transform_5, window_bounds = array<i64: 256, 256>}, {pipeline_mode = #tpu.pipeline_mode<synchronous>, transform_indices = @transform_6, window_bounds = array<i64: 1, 256>}, {pipeline_mode = #tpu.pipeline_mode<synchronous>, transform_indices = @transform_7, window_bounds = array<i64: 1, 256>}, {pipeline_mode = #tpu.pipeline_mode<synchronous>, transform_indices = @transform_8, window_bounds = array<i64: 256, 256>}, {pipeline_mode = #tpu.pipeline_mode<synchronous>, transform_indices = @transform_9, window_bounds = array<i64: 256, 256>}, {pipeline_mode = #tpu.pipeline_mode<synchronous>, transform_indices = @transform_10, window_bounds = array<i64: 256, 256>}, {pipeline_mode = #tpu.pipeline_mode<synchronous>, transform_indices = @transform_11, window_bounds = array<i64: 1, 256>}, {pipeline_mode = #tpu.pipeline_mode<synchronous>, transform_indices = @transform_12, window_bounds = array<i64: 1, 256>}, {pipeline_mode = #tpu.pipeline_mode<synchronous>, transform_indices = @transform_13, window_bounds = array<i64: 256, 16>}, {pipeline_mode = #tpu.pipeline_mode<synchronous>, transform_indices = @transform_14, window_bounds = array<i64: 16, 256>}, {pipeline_mode = #tpu.pipeline_mode<synchronous>, transform_indices = @transform_15, window_bounds = array<i64: 16, 4>}, {pipeline_mode = #tpu.pipeline_mode<synchronous>, transform_indices = @transform_16, window_bounds = array<i64: 4, 16>}, {transform_indices = @transform_17, window_bounds = array<i64: 4, 16, 256>}]} {
    %c0 = arith.constant 0 : index
    %c0_0 = arith.constant 0 : index
    %c0_1 = arith.constant 0 : index
    %0 = vector.load %arg1[%c0, %c0_0, %c0_1] : memref<4x16x256xf32, #tpu.memory_space<vmem>>, vector<4x16x256xf32>
    %c0_2 = arith.constant 0 : index
    %c0_3 = arith.constant 0 : index
    %1 = vector.load %arg2[%c0_2, %c0_3] : memref<1x256xf32, #tpu.memory_space<vmem>>, vector<1x256xf32>
    %2 = vector.shape_cast %1 : vector<1x256xf32> to vector<1x1x256xf32>
    %3 = vector.broadcast %2 : vector<1x1x256xf32> to vector<4x16x256xf32>
    %4 = arith.mulf %0, %3 : vector<4x16x256xf32>
    %c0_4 = arith.constant 0 : index
    %c0_5 = arith.constant 0 : index
    %5 = vector.load %arg3[%c0_4, %c0_5] : memref<1x256xf32, #tpu.memory_space<vmem>>, vector<1x256xf32>
    %6 = vector.shape_cast %5 : vector<1x256xf32> to vector<1x1x256xf32>
    %7 = vector.broadcast %6 : vector<1x1x256xf32> to vector<4x16x256xf32>
    %8 = arith.addf %4, %7 : vector<4x16x256xf32>
    %9 = arith.truncf %8 : vector<4x16x256xf32> to vector<4x16x256xbf16>
    %c0_6 = arith.constant 0 : index
    %c0_7 = arith.constant 0 : index
    %10 = vector.load %arg4[%c0_6, %c0_7] : memref<256x256xbf16, #tpu.memory_space<vmem>>, vector<256x256xbf16>
    %c0_8 = arith.constant 0 : index
    %c0_9 = arith.constant 0 : index
    %11 = vector.load %arg5[%c0_8, %c0_9] : memref<256x256xbf16, #tpu.memory_space<vmem>>, vector<256x256xbf16>
    %c0_10 = arith.constant 0 : index
    %c0_11 = arith.constant 0 : index
    %12 = vector.load %arg6[%c0_10, %c0_11] : memref<256x256xbf16, #tpu.memory_space<vmem>>, vector<256x256xbf16>
    %cst = arith.constant 0.000000e+00 : bf16
    %13 = vector.broadcast %cst : bf16 to vector<4x1x256xbf16>
    %14 = vector.extract_strided_slice %9 {offsets = [0, 0, 0], sizes = [4, 15, 256], strides = [1, 1, 1]} : vector<4x16x256xbf16> to vector<4x15x256xbf16>
    %15 = tpu.concatenate %13, %14 in 1 : vector<4x1x256xbf16>, vector<4x15x256xbf16> -> vector<4x16x256xbf16>
    %16 = vector.extract_strided_slice %9 {offsets = [0, 1, 0], sizes = [4, 15, 256], strides = [1, 1, 1]} : vector<4x16x256xbf16> to vector<4x15x256xbf16>
    %17 = tpu.concatenate %16, %13 in 1 : vector<4x15x256xbf16>, vector<4x1x256xbf16> -> vector<4x16x256xbf16>
    %18 = vector.shape_cast %15 : vector<4x16x256xbf16> to vector<64x256xbf16>
    %cst_12 = arith.constant dense<0.000000e+00> : vector<64x256xf32>
    %19 = tpu.matmul %18, %10, %cst_12 {dimension_numbers = #tpu.dot_dimension_numbers<[1], [0], [0], [1], [0, 0, 1, 1], [], []>} : vector<64x256xbf16>, vector<256x256xbf16>, vector<64x256xf32> -> vector<64x256xf32>
    %20 = vector.shape_cast %9 : vector<4x16x256xbf16> to vector<64x256xbf16>
    %cst_13 = arith.constant dense<0.000000e+00> : vector<64x256xf32>
    %21 = tpu.matmul %20, %11, %cst_13 {dimension_numbers = #tpu.dot_dimension_numbers<[1], [0], [0], [1], [0, 0, 1, 1], [], []>} : vector<64x256xbf16>, vector<256x256xbf16>, vector<64x256xf32> -> vector<64x256xf32>
    %22 = arith.addf %19, %21 : vector<64x256xf32>
    %23 = vector.shape_cast %17 : vector<4x16x256xbf16> to vector<64x256xbf16>
    %cst_14 = arith.constant dense<0.000000e+00> : vector<64x256xf32>
    %24 = tpu.matmul %23, %12, %cst_14 {dimension_numbers = #tpu.dot_dimension_numbers<[1], [0], [0], [1], [0, 0, 1, 1], [], []>} : vector<64x256xbf16>, vector<256x256xbf16>, vector<64x256xf32> -> vector<64x256xf32>
    %25 = arith.addf %22, %24 : vector<64x256xf32>
    %c0_15 = arith.constant 0 : index
    %c0_16 = arith.constant 0 : index
    %26 = vector.load %arg7[%c0_15, %c0_16] : memref<1x256xf32, #tpu.memory_space<vmem>>, vector<1x256xf32>
    %27 = vector.broadcast %26 : vector<1x256xf32> to vector<64x256xf32>
    %28 = arith.mulf %25, %27 : vector<64x256xf32>
    %c0_17 = arith.constant 0 : index
    %c0_18 = arith.constant 0 : index
    %29 = vector.load %arg8[%c0_17, %c0_18] : memref<1x256xf32, #tpu.memory_space<vmem>>, vector<1x256xf32>
    %30 = vector.broadcast %29 : vector<1x256xf32> to vector<64x256xf32>
    %31 = arith.addf %28, %30 : vector<64x256xf32>
    %cst_19 = arith.constant 0.000000e+00 : f32
    %32 = vector.broadcast %cst_19 : f32 to vector<64x256xf32>
    %33 = arith.maximumf %31, %32 : vector<64x256xf32>
    %34 = arith.truncf %33 : vector<64x256xf32> to vector<64x256xbf16>
    %35 = vector.shape_cast %34 : vector<64x256xbf16> to vector<4x16x256xbf16>
    %c0_20 = arith.constant 0 : index
    %c0_21 = arith.constant 0 : index
    %36 = vector.load %arg9[%c0_20, %c0_21] : memref<256x256xbf16, #tpu.memory_space<vmem>>, vector<256x256xbf16>
    %c0_22 = arith.constant 0 : index
    %c0_23 = arith.constant 0 : index
    %37 = vector.load %arg10[%c0_22, %c0_23] : memref<256x256xbf16, #tpu.memory_space<vmem>>, vector<256x256xbf16>
    %c0_24 = arith.constant 0 : index
    %c0_25 = arith.constant 0 : index
    %38 = vector.load %arg11[%c0_24, %c0_25] : memref<256x256xbf16, #tpu.memory_space<vmem>>, vector<256x256xbf16>
    %cst_26 = arith.constant 0.000000e+00 : bf16
    %39 = vector.broadcast %cst_26 : bf16 to vector<4x1x256xbf16>
    %40 = vector.extract_strided_slice %35 {offsets = [0, 0, 0], sizes = [4, 15, 256], strides = [1, 1, 1]} : vector<4x16x256xbf16> to vector<4x15x256xbf16>
    %41 = tpu.concatenate %39, %40 in 1 : vector<4x1x256xbf16>, vector<4x15x256xbf16> -> vector<4x16x256xbf16>
    %42 = vector.extract_strided_slice %35 {offsets = [0, 1, 0], sizes = [4, 15, 256], strides = [1, 1, 1]} : vector<4x16x256xbf16> to vector<4x15x256xbf16>
    %43 = tpu.concatenate %42, %39 in 1 : vector<4x15x256xbf16>, vector<4x1x256xbf16> -> vector<4x16x256xbf16>
    %44 = vector.shape_cast %41 : vector<4x16x256xbf16> to vector<64x256xbf16>
    %cst_27 = arith.constant dense<0.000000e+00> : vector<64x256xf32>
    %45 = tpu.matmul %44, %36, %cst_27 {dimension_numbers = #tpu.dot_dimension_numbers<[1], [0], [0], [1], [0, 0, 1, 1], [], []>} : vector<64x256xbf16>, vector<256x256xbf16>, vector<64x256xf32> -> vector<64x256xf32>
    %46 = vector.shape_cast %35 : vector<4x16x256xbf16> to vector<64x256xbf16>
    %cst_28 = arith.constant dense<0.000000e+00> : vector<64x256xf32>
    %47 = tpu.matmul %46, %37, %cst_28 {dimension_numbers = #tpu.dot_dimension_numbers<[1], [0], [0], [1], [0, 0, 1, 1], [], []>} : vector<64x256xbf16>, vector<256x256xbf16>, vector<64x256xf32> -> vector<64x256xf32>
    %48 = arith.addf %45, %47 : vector<64x256xf32>
    %49 = vector.shape_cast %43 : vector<4x16x256xbf16> to vector<64x256xbf16>
    %cst_29 = arith.constant dense<0.000000e+00> : vector<64x256xf32>
    %50 = tpu.matmul %49, %38, %cst_29 {dimension_numbers = #tpu.dot_dimension_numbers<[1], [0], [0], [1], [0, 0, 1, 1], [], []>} : vector<64x256xbf16>, vector<256x256xbf16>, vector<64x256xf32> -> vector<64x256xf32>
    %51 = arith.addf %48, %50 : vector<64x256xf32>
    %c0_30 = arith.constant 0 : index
    %c0_31 = arith.constant 0 : index
    %52 = vector.load %arg12[%c0_30, %c0_31] : memref<1x256xf32, #tpu.memory_space<vmem>>, vector<1x256xf32>
    %53 = vector.broadcast %52 : vector<1x256xf32> to vector<64x256xf32>
    %54 = arith.mulf %51, %53 : vector<64x256xf32>
    %c0_32 = arith.constant 0 : index
    %c0_33 = arith.constant 0 : index
    %55 = vector.load %arg13[%c0_32, %c0_33] : memref<1x256xf32, #tpu.memory_space<vmem>>, vector<1x256xf32>
    %56 = vector.broadcast %55 : vector<1x256xf32> to vector<64x256xf32>
    %57 = arith.addf %54, %56 : vector<64x256xf32>
    %58 = vector.shape_cast %57 : vector<64x256xf32> to vector<4x16x256xf32>
    %cst_34 = arith.constant dense<0.000000e+00> : vector<4x256xf32>
    %59 = vector.multi_reduction <add>, %58, %cst_34 [1] : vector<4x16x256xf32> to vector<4x256xf32>
    %c0_35 = arith.constant 0 : index
    %c0_36 = arith.constant 0 : index
    %60 = vector.load %arg14[%c0_35, %c0_36] : memref<256x16xf32, #tpu.memory_space<vmem>>, vector<256x16xf32>
    %cst_37 = arith.constant dense<0.000000e+00> : vector<4x16xf32>
    %61 = tpu.matmul %59, %60, %cst_37 {dimension_numbers = #tpu.dot_dimension_numbers<[1], [0], [0], [1], [0, 0, 1, 1], [], []>} : vector<4x256xf32>, vector<256x16xf32>, vector<4x16xf32> -> vector<4x16xf32>
    %62 = vector.shape_cast %61 : vector<4x16xf32> to vector<4x16x1xf32>
    %c0_38 = arith.constant 0 : index
    %c0_39 = arith.constant 0 : index
    %63 = vector.load %arg16[%c0_38, %c0_39] : memref<16x4xf32, #tpu.memory_space<vmem>>, vector<16x4xf32>
    %64 = vector.shape_cast %63 : vector<16x4xf32> to vector<1x16x4xf32>
    %65 = vector.broadcast %62 : vector<4x16x1xf32> to vector<4x16x4xf32>
    %66 = vector.broadcast %64 : vector<1x16x4xf32> to vector<4x16x4xf32>
    %67 = arith.mulf %65, %66 : vector<4x16x4xf32>
    %cst_40 = arith.constant dense<0.000000e+00> : vector<4x4xf32>
    %68 = vector.multi_reduction <add>, %67, %cst_40 [1] : vector<4x16x4xf32> to vector<4x4xf32>
    %cst_41 = arith.constant 0.000000e+00 : f32
    %69 = vector.broadcast %cst_41 : f32 to vector<4x4xf32>
    %70 = arith.maximumf %68, %69 : vector<4x4xf32>
    %71 = vector.shape_cast %70 : vector<4x4xf32> to vector<4x4x1xf32>
    %c0_42 = arith.constant 0 : index
    %c0_43 = arith.constant 0 : index
    %72 = vector.load %arg17[%c0_42, %c0_43] : memref<4x16xf32, #tpu.memory_space<vmem>>, vector<4x16xf32>
    %73 = vector.shape_cast %72 : vector<4x16xf32> to vector<1x4x16xf32>
    %74 = vector.broadcast %71 : vector<4x4x1xf32> to vector<4x4x16xf32>
    %75 = vector.broadcast %73 : vector<1x4x16xf32> to vector<4x4x16xf32>
    %76 = arith.mulf %74, %75 : vector<4x4x16xf32>
    %cst_44 = arith.constant dense<0.000000e+00> : vector<4x16xf32>
    %77 = vector.multi_reduction <add>, %76, %cst_44 [1] : vector<4x4x16xf32> to vector<4x16xf32>
    %78 = arith.negf %77 : vector<4x16xf32>
    %79 = math.exp %78 : vector<4x16xf32>
    %cst_45 = arith.constant 1.000000e+00 : f32
    %80 = vector.broadcast %cst_45 : f32 to vector<4x16xf32>
    %81 = arith.addf %80, %79 : vector<4x16xf32>
    %82 = arith.divf %80, %81 : vector<4x16xf32>
    %c0_46 = arith.constant 0 : index
    %c0_47 = arith.constant 0 : index
    %83 = vector.load %arg15[%c0_46, %c0_47] : memref<16x256xf32, #tpu.memory_space<vmem>>, vector<16x256xf32>
    %cst_48 = arith.constant dense<0.000000e+00> : vector<4x256xf32>
    %84 = tpu.matmul %82, %83, %cst_48 {dimension_numbers = #tpu.dot_dimension_numbers<[1], [0], [0], [1], [0, 0, 1, 1], [], []>} : vector<4x16xf32>, vector<16x256xf32>, vector<4x256xf32> -> vector<4x256xf32>
    %85 = vector.shape_cast %84 : vector<4x256xf32> to vector<4x1x256xf32>
    %86 = vector.broadcast %85 : vector<4x1x256xf32> to vector<4x16x256xf32>
    %87 = arith.mulf %58, %86 : vector<4x16x256xf32>
    %88 = arith.addf %87, %0 : vector<4x16x256xf32>
    %c0_49 = arith.constant 0 : index
    %c0_50 = arith.constant 0 : index
    %c0_51 = arith.constant 0 : index
    %89 = vector.load %arg18[%c0_49, %c0_50, %c0_51] : memref<4x16x256xf32, #tpu.memory_space<vmem>>, vector<4x16x256xf32>
    tpu.vector_store %arg18[%c0_49, %c0_50, %c0_51], %88 {strides = array<i32>} : memref<4x16x256xf32, #tpu.memory_space<vmem>>, vector<4x16x256xf32>,
    return
  }
  func.func @transform_0(%arg0: i32) -> (i32, i32, i32) {
    %c0_i32 = arith.constant 0 : i32
    %c0_i32_0 = arith.constant 0 : i32
    %c0_i32_1 = arith.constant 0 : i32
    return %arg0, %c0_i32, %c0_i32_0 : i32, i32, i32
  }
  func.func @transform_1(%arg0: i32) -> (i32, i32) {
    %c0_i32 = arith.constant 0 : i32
    %c0_i32_0 = arith.constant 0 : i32
    %c0_i32_1 = arith.constant 0 : i32
    return %c0_i32, %c0_i32_0 : i32, i32
  }
  func.func @transform_2(%arg0: i32) -> (i32, i32) {
    %c0_i32 = arith.constant 0 : i32
    %c0_i32_0 = arith.constant 0 : i32
    %c0_i32_1 = arith.constant 0 : i32
    return %c0_i32, %c0_i32_0 : i32, i32
  }
  func.func @transform_3(%arg0: i32) -> (i32, i32) {
    %c0_i32 = arith.constant 0 : i32
    %c0_i32_0 = arith.constant 0 : i32
    %c0_i32_1 = arith.constant 0 : i32
    return %c0_i32, %c0_i32_0 : i32, i32
  }
  func.func @transform_4(%arg0: i32) -> (i32, i32) {
    %c0_i32 = arith.constant 0 : i32
    %c0_i32_0 = arith.constant 0 : i32
    %c0_i32_1 = arith.constant 0 : i32
    return %c0_i32, %c0_i32_0 : i32, i32
  }
  func.func @transform_5(%arg0: i32) -> (i32, i32) {
    %c0_i32 = arith.constant 0 : i32
    %c0_i32_0 = arith.constant 0 : i32
    %c0_i32_1 = arith.constant 0 : i32
    return %c0_i32, %c0_i32_0 : i32, i32
  }
  func.func @transform_6(%arg0: i32) -> (i32, i32) {
    %c0_i32 = arith.constant 0 : i32
    %c0_i32_0 = arith.constant 0 : i32
    %c0_i32_1 = arith.constant 0 : i32
    return %c0_i32, %c0_i32_0 : i32, i32
  }
  func.func @transform_7(%arg0: i32) -> (i32, i32) {
    %c0_i32 = arith.constant 0 : i32
    %c0_i32_0 = arith.constant 0 : i32
    %c0_i32_1 = arith.constant 0 : i32
    return %c0_i32, %c0_i32_0 : i32, i32
  }
  func.func @transform_8(%arg0: i32) -> (i32, i32) {
    %c0_i32 = arith.constant 0 : i32
    %c0_i32_0 = arith.constant 0 : i32
    %c0_i32_1 = arith.constant 0 : i32
    return %c0_i32, %c0_i32_0 : i32, i32
  }
  func.func @transform_9(%arg0: i32) -> (i32, i32) {
    %c0_i32 = arith.constant 0 : i32
    %c0_i32_0 = arith.constant 0 : i32
    %c0_i32_1 = arith.constant 0 : i32
    return %c0_i32, %c0_i32_0 : i32, i32
  }
  func.func @transform_10(%arg0: i32) -> (i32, i32) {
    %c0_i32 = arith.constant 0 : i32
    %c0_i32_0 = arith.constant 0 : i32
    %c0_i32_1 = arith.constant 0 : i32
    return %c0_i32, %c0_i32_0 : i32, i32
  }
  func.func @transform_11(%arg0: i32) -> (i32, i32) {
    %c0_i32 = arith.constant 0 : i32
    %c0_i32_0 = arith.constant 0 : i32
    %c0_i32_1 = arith.constant 0 : i32
    return %c0_i32, %c0_i32_0 : i32, i32
  }
  func.func @transform_12(%arg0: i32) -> (i32, i32) {
    %c0_i32 = arith.constant 0 : i32
    %c0_i32_0 = arith.constant 0 : i32
    %c0_i32_1 = arith.constant 0 : i32
    return %c0_i32, %c0_i32_0 : i32, i32
  }
  func.func @transform_13(%arg0: i32) -> (i32, i32) {
    %c0_i32 = arith.constant 0 : i32
    %c0_i32_0 = arith.constant 0 : i32
    %c0_i32_1 = arith.constant 0 : i32
    return %c0_i32, %c0_i32_0 : i32, i32
  }
  func.func @transform_14(%arg0: i32) -> (i32, i32) {
    %c0_i32 = arith.constant 0 : i32
    %c0_i32_0 = arith.constant 0 : i32
    %c0_i32_1 = arith.constant 0 : i32
    return %c0_i32, %c0_i32_0 : i32, i32
  }
  func.func @transform_15(%arg0: i32) -> (i32, i32) {
    %c0_i32 = arith.constant 0 : i32
    %c0_i32_0 = arith.constant 0 : i32
    %c0_i32_1 = arith.constant 0 : i32
    return %c0_i32, %c0_i32_0 : i32, i32
  }
  func.func @transform_16(%arg0: i32) -> (i32, i32) {
    %c0_i32 = arith.constant 0 : i32
    %c0_i32_0 = arith.constant 0 : i32
    %c0_i32_1 = arith.constant 0 : i32
    return %c0_i32, %c0_i32_0 : i32, i32
  }
  func.func @transform_17(%arg0: i32) -> (i32, i32, i32) {
    %c0_i32 = arith.constant 0 : i32
    %c0_i32_0 = arith.constant 0 : i32
    %c0_i32_1 = arith.constant 0 : i32
    return %arg0, %c0_i32, %c0_i32_0 : i32, i32, i32
  }
}

</mosaic_0001>

<bundles_post_ra>
// kernel: tpu_custom_call.1
= control target key start
LH: loop header
LB: loop body
LE: loop exit
PB: predicated region body
PF: predicated region fallthrough
CT: control target
= control target key end

     0   :  { %s4537_s0 = inlined_call_operand.hbm [shape: f32[4,16,256], index: 0, kind: input, shape index: {}]   ;;  %s4538_s1 = inlined_call_operand.vmem [shape: f32[1,256], index: 1, kind: input, shape index: {}]   ;;  %s4539_s2 = inlined_call_operand.vmem [shape: f32[1,256], index: 2, kind: input, shape index: {}]   ;;  %s4540_s3 = inlined_call_operand.vmem [shape: bf16[256,256], index: 3, kind: input, shape index: {}]   ;;  %s4541_s4 = inlined_call_operand.hbm [shape: bf16[256,256], index: 4, kind: input, shape index: {}]   ;;  %s4542_s5 = inlined_call_operand.hbm [shape: bf16[256,256], index: 5, kind: input, shape index: {}]   ;;  %s4543_s6 = inlined_call_operand.vmem [shape: f32[1,256], index: 6, kind: input, shape index: {}]   ;;  %s4544_s7 = inlined_call_operand.vmem [shape: f32[1,256], index: 7, kind: input, shape index: {}]   ;;  %s4545_s8 = inlined_call_operand.hbm [shape: bf16[256,256], index: 8, kind: input, shape index: {}]   ;;  %s4546_s9 = inlined_call_operand.hbm [shape: bf16[256,256], index: 9, kind: input, shape index: {}]   ;;  %s4547_s10 = inlined_call_operand.hbm [shape: bf16[256,256], index: 10, kind: input, shape index: {}]   ;;  %s4548_s11 = inlined_call_operand.vmem [shape: f32[1,256], index: 11, kind: input, shape index: {}]   ;;  %s4549_s12 = inlined_call_operand.vmem [shape: f32[1,256], index: 12, kind: input, shape index: {}]   ;;  %s4550_s13 = inlined_call_operand.vmem [shape: f32[256,16], index: 13, kind: input, shape index: {}]   ;;  %s4551_s14 = inlined_call_operand.vmem [shape: f32[16,256], index: 14, kind: input, shape index: {}]   ;;  %s4552_s15 = inlined_call_operand.vmem [shape: f32[16,4], index: 15, kind: input, shape index: {}]   ;;  %s4553_s16 = inlined_call_operand.vmem [shape: f32[4,16], index: 16, kind: input, shape index: {}]   ;;  %s4554_s17 = inlined_call_operand.hbm [shape: f32[4,16,256], index: 17, kind: output, shape index: {}]  }
   0x1   :  { %4559 = sst [smem:[#allocation19_spill]] %s4537_s0 }
   0x2   :  { %4560 = sst [smem:[#allocation20_spill]] %s4538_s1 }
   0x3   :  { %4561 = sst [smem:[#allocation21_spill]] %s4554_s17 }
   0x4   :  { %22 = vsyncpa [#allocation3], 0 }
   0x5   :  { %23 = vsyncpa [#allocation6], 0 }
   0x6   :  { %24 = vsyncpa [#allocation9], 0 }
   0x7   :  { %25 = vsyncpa [#allocation12], 0 }
   0x8   :  { %26 = vsyncpa [#allocation4], 0  ;;  %s3583_s24 = smov [#allocation5]   ;;  %s3419_s28 = scalar_lea.hbm %s4541_s4, 4096 }
   0x9   :  { %s50_s25 = sshll.u32 %s3583_s24, 4  ;;  %p3420_p0 = scmp.ne.s32.totalorder %s4541_s4, %s3419_s28  ;;  %s51_s25 = int_to_ptr.vmem [resolvable:$true] %s50_s25 }
   0xa   :  { %p3423_p1 = scmp.lt.u32.totalorder %s3419_s28, %s4541_s4 }
   0xc   :  { %p3425_p2 = pnand %p3423_p1, %p3420_p0 }
   0xe   :  { %3428 = shalt.err (!%p3425_p2)
}
   0xf   :  { %s3429_s19 = scalar_lea.vmem %s51_s25, 4096  ;;  %p3434_p4 = scmp.lt.s32.totalorder %s51_s25, %s51_s25 }
  0x10   :  { %p3430_p3 = scmp.ne.s32.totalorder %s51_s25, %s3429_s19  ;;  %p3435_p5 = scmp.lt.s32.totalorder %s3429_s19, %s3429_s19 }
  0x12   :  { %p3436_p6 = por %p3435_p5, %p3434_p4 }
  0x14   :  { %p3437_p7 = pnand %p3436_p6, %p3430_p3 }
  0x16   :  { %3440 = shalt.err (!%p3437_p7)
}
  0x17   :  { %s4557_s1 = smov 128   ;;  %s3585_s20 = smov 8  }
  0x18   :  { %56 = dma.hbm_to_vmem [thread:$0]  %s4541_s4, 4096, %s51_s25, [#allocation6], %s4557_s1, %s4557_s1, %s3585_s20  }
  0x19   :  { %s3586_s23 = smov [#allocation8]   ;;  %s3587_s26 = smov [#allocation2]  }
  0x1a   :  { %s78_s24 = sshll.u32 %s3586_s23, 4  ;;  %s32_s27 = sshll.u32 %s3587_s26, 4  ;;  %s79_s24 = int_to_ptr.vmem [resolvable:$true] %s78_s24  ;;  %s33_s27 = int_to_ptr.vmem [resolvable:$true] %s32_s27 }
  0x1b   :  { %s3441_s0 = scalar_lea.hbm %s4545_s8, 4096 }
  0x1c   :  { %p3442_p8 = scmp.ne.s32.totalorder %s4545_s8, %s3441_s0  ;;  %p3445_p9 = scmp.lt.u32.totalorder %s3441_s0, %s4545_s8 }
  0x1e   :  { %p3447_p10 = pnand %p3445_p9, %p3442_p8 }
  0x20   :  { %3450 = shalt.err (!%p3447_p10)
}
  0x21   :  { %s3451_s4 = scalar_lea.vmem %s79_s24, 4096  ;;  %p3456_p12 = scmp.lt.s32.totalorder %s79_s24, %s79_s24 }
  0x22   :  { %p3452_p11 = scmp.ne.s32.totalorder %s79_s24, %s3451_s4  ;;  %p3457_p13 = scmp.lt.s32.totalorder %s3451_s4, %s3451_s4 }
  0x24   :  { %p3458_p0 = por %p3457_p13, %p3456_p12 }
  0x26   :  { %p3459_p1 = pnand %p3458_p0, %p3452_p11 }
  0x28   :  { %3462 = shalt.err (!%p3459_p1)
}
  0x29   :  { %84 = dma.hbm_to_vmem [thread:$0]  %s4545_s8, 4096, %s79_s24, [#allocation9], %s4557_s1, %s4557_s1, %s3585_s20  }
  0x2a   :  { %s4562_s23 = sld [smem:[#allocation19_spill]] }
  0x30   :  { %s3463_s26 = scalar_lea.hbm %s4562_s23, 2048 }
  0x31   :  { %p3464_p2 = scmp.ne.s32.totalorder %s4562_s23, %s3463_s26  ;;  %p3467_p3 = scmp.lt.u32.totalorder %s3463_s26, %s4562_s23 }
  0x33   :  { %p3469_p4 = pnand %p3467_p3, %p3464_p2 }
  0x35   :  { %3472 = shalt.err (!%p3469_p4)
}
  0x36   :  { %s3473_s18 = scalar_lea.vmem %s33_s27, 2048  ;;  %p3478_p6 = scmp.lt.s32.totalorder %s33_s27, %s33_s27 }
  0x37   :  { %p3474_p5 = scmp.ne.s32.totalorder %s33_s27, %s3473_s18  ;;  %p3479_p7 = scmp.lt.s32.totalorder %s3473_s18, %s3473_s18 }
  0x39   :  { %p3480_p8 = por %p3479_p7, %p3478_p6 }
  0x3b   :  { %p3481_p9 = pnand %p3480_p8, %p3474_p5 }
  0x3d   :  { %3484 = shalt.err (!%p3481_p9)
}
  0x3e   :  { %s3588_s8 = smov 256   ;;  %s3589_s24 = smov 16  }
  0x3f   :  { %38 = dma.hbm_to_vmem [thread:$0]  %s4562_s23, 2048, %s33_s27, [#allocation3], %s3588_s8, %s3588_s8, %s3589_s24  }
  0x40   :  { %s3590_s25 = smov [#allocation7]   ;;  %s3591_s22 = smov [#allocation10]  }
  0x41   :  { %s62_s21 = sshll.u32 %s3590_s25, 4  ;;  %s90_s17 = sshll.u32 %s3591_s22, 4  ;;  %s63_s21 = int_to_ptr.vmem [resolvable:$true] %s62_s21  ;;  %s91_s17 = int_to_ptr.vmem [resolvable:$true] %s90_s17 }
  0x42   :  { %s3485_s29 = scalar_lea.hbm %s4542_s5, 4096 }
  0x43   :  { %p3486_p10 = scmp.ne.s32.totalorder %s4542_s5, %s3485_s29  ;;  %p3489_p11 = scmp.lt.u32.totalorder %s3485_s29, %s4542_s5 }
  0x45   :  { %p3491_p12 = pnand %p3489_p11, %p3486_p10 }
  0x47   :  { %3494 = shalt.err (!%p3491_p12)
}
  0x48   :  { %s3495_s27 = scalar_lea.vmem %s63_s21, 4096  ;;  %p3500_p0 = scmp.lt.s32.totalorder %s63_s21, %s63_s21 }
  0x49   :  { %p3496_p13 = scmp.ne.s32.totalorder %s63_s21, %s3495_s27  ;;  %p3501_p1 = scmp.lt.s32.totalorder %s3495_s27, %s3495_s27 }
  0x4b   :  { %p3502_p2 = por %p3501_p1, %p3500_p0 }
  0x4d   :  { %p3503_p3 = pnand %p3502_p2, %p3496_p13 }
  0x4f   :  { %3506 = shalt.err (!%p3503_p3)
}
  0x50   :  { %s4563_s23 = smov 128   ;;  %s3507_s22 = scalar_lea.hbm %s4546_s9, 4096 }
  0x51   :  { %68 = dma.hbm_to_vmem [thread:$0]  %s4542_s5, 4096, %s63_s21, [#allocation6], %s4563_s23, %s4563_s23, %s3585_s20  }
  0x52   :  { %p3508_p4 = scmp.ne.s32.totalorder %s4546_s9, %s3507_s22  ;;  %p3511_p5 = scmp.lt.u32.totalorder %s3507_s22, %s4546_s9 }
  0x54   :  { %p3513_p6 = pnand %p3511_p5, %p3508_p4 }
  0x56   :  { %3516 = shalt.err (!%p3513_p6)
}
  0x57   :  { %s3517_s30 = scalar_lea.vmem %s91_s17, 4096  ;;  %p3522_p8 = scmp.lt.s32.totalorder %s91_s17, %s91_s17 }
  0x58   :  { %p3518_p7 = scmp.ne.s32.totalorder %s91_s17, %s3517_s30  ;;  %p3523_p9 = scmp.lt.s32.totalorder %s3517_s30, %s3517_s30 }
  0x5a   :  { %p3524_p10 = por %p3523_p9, %p3522_p8 }
  0x5c   :  { %p3525_p11 = pnand %p3524_p10, %p3518_p7 }
  0x5e   :  { %3528 = shalt.err (!%p3525_p11)
}
  0x5f   :  { %96 = dma.hbm_to_vmem [thread:$0]  %s4546_s9, 4096, %s91_s17, [#allocation9], %s4563_s23, %s4563_s23, %s3585_s20  }
  0x60   :  { %s3592_s18 = smov [#allocation11]   ;;  %s3529_s25 = scalar_lea.hbm %s4547_s10, 4096 }
  0x61   :  { %s102_s27 = sshll.u32 %s3592_s18, 4  ;;  %p3530_p12 = scmp.ne.s32.totalorder %s4547_s10, %s3529_s25  ;;  %s103_s27 = int_to_ptr.vmem [resolvable:$true] %s102_s27 }
  0x62   :  { %p3533_p13 = scmp.lt.u32.totalorder %s3529_s25, %s4547_s10 }
  0x64   :  { %p3535_p0 = pnand %p3533_p13, %p3530_p12 }
  0x66   :  { %3538 = shalt.err (!%p3535_p0)
}
  0x67   :  { %s3539_s29 = scalar_lea.vmem %s103_s27, 4096  ;;  %p3544_p2 = scmp.lt.s32.totalorder %s103_s27, %s103_s27 }
  0x68   :  { %p3540_p1 = scmp.ne.s32.totalorder %s103_s27, %s3539_s29  ;;  %p3545_p3 = scmp.lt.s32.totalorder %s3539_s29, %s3539_s29 }
  0x6a   :  { %p3546_p4 = por %p3545_p3, %p3544_p2 }
  0x6c   :  { %p3547_p5 = pnand %p3546_p4, %p3540_p1 }
  0x6e   :  { %3550 = shalt.err (!%p3547_p5)
}
  0x6f   :  { %108 = dma.hbm_to_vmem [thread:$0]  %s4547_s10, 4096, %s103_s27, [#allocation12], %s4563_s23, %s4563_s23, %s3585_s20  }
  0x70   :  { %3573 = dma.done.wait [#allocation3], 2048  }
  0x71   :  { %3574 = vsyncadd [#allocation3], 4294965248 }
  0x72   :  { %3575 = dma.done.wait [#allocation6], 8192  }
  0x73   :  { %3576 = vsyncadd [#allocation6], 4294959104 }
  0x74   :  { %3577 = dma.done.wait [#allocation9], 8192  }
  0x75   :  { %3578 = vsyncadd [#allocation9], 4294959104 }
  0x76   :  { %3579 = dma.done.wait [#allocation12], 4096  }
  0x77   :  { %3580 = vsyncadd [#allocation12], 4294963200  ;;  %v3099_v0 = vld [vmem:[#allocation5 + $0x4] ss:$8 sps:$4 sm:$0xff]   ;;  %v3101_v1 = vld [vmem:[#allocation5] ss:$8 sps:$4 sm:$0xff]   ;;  %v158_v8 = vlaneseq }
  0x78   :  { %586 = vmatprep.subr.bf16.mxu0 %v3099_v0  ;;  %v3102_v2 = vld [vmem:[#allocation5 + $0x14] ss:$8 sps:$4 sm:$0xff]   ;;  %v3104_v3 = vld [vmem:[#allocation5 + $0x10] ss:$8 sps:$4 sm:$0xff]   ;;  %v3105_v4 = vld [vmem:[#allocation5 + $0x24] ss:$8 sps:$4 sm:$0xff]  }
  0x79   :  { %587 = vmatpush1.bf16.msra.mxu0 %v3101_v1  ;;  %v3107_v5 = vld [vmem:[#allocation5 + $0x20] ss:$8 sps:$4 sm:$0xff]   ;;  %v3108_v6 = vld [vmem:[#allocation5 + $0x34] ss:$8 sps:$4 sm:$0xff]   ;;  %v3110_v7 = vld [vmem:[#allocation5 + $0x30] ss:$8 sps:$4 sm:$0xff]  }
  0x7a   :  { %588 = vmatprep.subr.bf16.mxu0 %v3102_v2  ;;  %v3111_v9 = vld [vmem:[#allocation5 + $0x44] ss:$8 sps:$4 sm:$0xff]   ;;  %v3113_v10 = vld [vmem:[#allocation5 + $0x40] ss:$8 sps:$4 sm:$0xff]   ;;  %v3776_v11 = vshrl.u32 %v158_v8, 7  ;;  %v143_v17 = vld [vmem:[#allocation2 + $0x18] sm:$0xff] }
  0x7b   :  { %v3114_v12 = vld [vmem:[#allocation5 + $0x54] ss:$8 sps:$4 sm:$0xff]   ;;  %v3116_v13 = vld [vmem:[#allocation5 + $0x50] ss:$8 sps:$4 sm:$0xff]   ;;  %v3117_v15 = vld [vmem:[#allocation5 + $0x64] ss:$8 sps:$4 sm:$0xff]  }
  0x7c   :  { %v3779_v14 = vsub.s32 1, %v3776_v11  ;;  %v141_v16 = vld [vmem:[#allocation2 + $0x8] sm:$0xff]  ;;  %s4564_s23 = sld [smem:[#allocation20_spill]]  ;;  %v184_v19 = vld [vmem:[%s4539_s2] sm:$0x3]  ;;  %v3801_v39 = vsub.s32 0, %v3776_v11 }
  0x7d   :  { %589 = vmatpush1.bf16.msra.mxu0 %v3104_v3  ;;  %v3119_v20 = vld [vmem:[#allocation5 + $0x60] ss:$8 sps:$4 sm:$0xff]   ;;  %v3120_v23 = vld [vmem:[#allocation5 + $0x74] ss:$8 sps:$4 sm:$0xff]   ;;  %v3122_v26 = vld [vmem:[#allocation5 + $0x70] ss:$8 sps:$4 sm:$0xff]  }
  0x7e   :  { %590 = vmatprep.subr.bf16.mxu0 %v3105_v4  ;;  %v3791_v22 = vrot.slane %v184_v19, %v3779_v14  ;;  %v3123_v29 = vld [vmem:[#allocation5 + $0x84] ss:$8 sps:$4 sm:$0xff]   ;;  %v3125_v31 = vld [vmem:[#allocation5 + $0x80] ss:$8 sps:$4 sm:$0xff]   ;;  %v3126_v32 = vld [vmem:[#allocation5 + $0x94] ss:$8 sps:$4 sm:$0xff]   ;;  %v3809_v51 = vrot.slane %v184_v19, %v3801_v39 }
  0x7f   :  { %v3128_v33 = vld [vmem:[#allocation5 + $0x90] ss:$8 sps:$4 sm:$0xff]   ;;  %v3129_v34 = vld [vmem:[#allocation5 + $0xa4] ss:$8 sps:$4 sm:$0xff]   ;;  %v3131_v35 = vld [vmem:[#allocation5 + $0xa0] ss:$8 sps:$4 sm:$0xff]  }
  0x80   :  { %v3132_v36 = vld [vmem:[#allocation5 + $0xb4] ss:$8 sps:$4 sm:$0xff]   ;;  %v3134_v37 = vld [vmem:[#allocation5 + $0xb0] ss:$8 sps:$4 sm:$0xff]   ;;  %v3135_v38 = vld [vmem:[#allocation5 + $0xc4] ss:$8 sps:$4 sm:$0xff]  }
  0x81   :  { %591 = vmatpush1.bf16.msra.mxu0 %v3107_v5  ;;  %v3137_v40 = vld [vmem:[#allocation5 + $0xc0] ss:$8 sps:$4 sm:$0xff]   ;;  %v3138_v41 = vld [vmem:[#allocation5 + $0xd4] ss:$8 sps:$4 sm:$0xff]   ;;  %v3140_v42 = vld [vmem:[#allocation5 + $0xd0] ss:$8 sps:$4 sm:$0xff]  }
  0x82   :  { %592 = vmatprep.subr.bf16.mxu0 %v3108_v6  ;;  %v156_v18 = vld [vmem:[%s4564_s23] sm:$0x3]  ;;  %v3141_v43 = vld [vmem:[#allocation5 + $0xe4] ss:$8 sps:$4 sm:$0xff]   ;;  %v142_v46 = vld [vmem:[#allocation2 + $0x10] sm:$0xff]  ;;  %vm380_vm0 = vcmask 1040384  }
  0x83   :  { %v3788_v21 = vrot.slane %v156_v18, %v3779_v14  ;;  %v3804_v44 = vrot.slane %v156_v18, %v3801_v39  ;;  %v140_v45 = vld [vmem:[#allocation2] sm:$0xff]  ;;  %v145_v47 = vld [vmem:[#allocation2 + $0x28] sm:$0xff]  ;;  %v147_v48 = vld [vmem:[#allocation2 + $0x38] sm:$0xff]  ;;  %vm381_vm1 = vsmask.f32 256  ;;  %vm415_vm3 = vcmask 1047552  }
  0x84   :  { %v3143_v52 = vld [vmem:[#allocation5 + $0xe0] ss:$8 sps:$4 sm:$0xff]   ;;  %v3144_v55 = vld [vmem:[#allocation5 + $0xf4] ss:$8 sps:$4 sm:$0xff]   ;;  %v3146_v56 = vld [vmem:[#allocation5 + $0xf0] ss:$8 sps:$4 sm:$0xff]  }
  0x85   :  { %593 = vmatpush1.bf16.msra.mxu0 %v3110_v7  ;;  %v169_v24 = vmul.f32 %v3788_v21, %v141_v16  ;;  %v171_v25 = vmul.f32 %v3788_v21, %v143_v17  ;;  %v168_v49 = vmul.f32 %v3804_v44, %v140_v45  ;;  %v170_v50 = vmul.f32 %v3804_v44, %v142_v46  ;;  %v3149_v57 = vld [vmem:[%s4540_s3 + $0x4] ss:$8 sps:$4 sm:$0xff]   ;;  %v146_v63 = vld [vmem:[#allocation2 + $0x30] sm:$0xff]  ;;  %v151_v1 = vld [vmem:[#allocation2 + $0x58] sm:$0xff] }
  0x86   :  { %594 = vmatprep.subr.bf16.mxu0 %v3111_v9  ;;  %v173_v53 = vmul.f32 %v3788_v21, %v145_v47  ;;  %v175_v54 = vmul.f32 %v3788_v21, %v147_v48  ;;  %v144_v62 = vld [vmem:[#allocation2 + $0x20] sm:$0xff]  ;;  %v149_v0 = vld [vmem:[#allocation2 + $0x48] sm:$0xff]  ;;  %v174_v4 = vmul.f32 %v3804_v44, %v146_v63  ;;  %v179_v8 = vmul.f32 %v3788_v21, %v151_v1  ;;  %v3152_v9 = vld [vmem:[%s4540_s3 + $0x14] ss:$8 sps:$4 sm:$0xff]  }
  0x87   :  { %v197_v27 = vadd.f32 %v3791_v22, %v169_v24  ;;  %v199_v28 = vadd.f32 %v3791_v22, %v171_v25  ;;  %v196_v58 = vadd.f32 %v3809_v51, %v168_v49  ;;  %v198_v59 = vadd.f32 %v3809_v51, %v170_v50  ;;  %v3147_v5 = vld [vmem:[%s4540_s3] ss:$8 sps:$4 sm:$0xff]   ;;  %v150_v19 = vld [vmem:[#allocation2 + $0x50] sm:$0xff]  ;;  %vm3876_vm2 = vmand %vm380_vm0, %vm381_vm1 }
  0x88   :  { %v201_v60 = vadd.f32 %v3791_v22, %v173_v53  ;;  %v203_v61 = vadd.f32 %v3791_v22, %v175_v54  ;;  %v172_v3 = vmul.f32 %v3804_v44, %v144_v62  ;;  %v177_v7 = vmul.f32 %v3788_v21, %v149_v0  ;;  %v148_v18 = vld [vmem:[#allocation2 + $0x40] sm:$0xff]  ;;  %v3158_v25 = vld [vmem:[%s4540_s3 + $0x34] ss:$8 sps:$4 sm:$0xff]   ;;  %v3168_v62 = vld [vmem:[%s4540_s3 + $0x70] ss:$8 sps:$4 sm:$0xff]  }
  0x89   :  { %595 = vmatpush1.bf16.msra.mxu0 %v3113_v10  ;;  %v3797_v30 = vpack.c.bf16 %v199_v28, %v197_v27  ;;  %v3820_v2 = vpack.c.bf16 %v198_v59, %v196_v58  ;;  %v3150_v10 = vld [vmem:[%s4540_s3 + $0x10] ss:$8 sps:$4 sm:$0xff]   ;;  %v207_v17 = vadd.f32 %v3791_v22, %v179_v8  ;;  %v3153_v24 = vld [vmem:[%s4540_s3 + $0x20] ss:$8 sps:$4 sm:$0xff]   ;;  %v176_v27 = vmul.f32 %v3804_v44, %v148_v18  ;;  %v3164_v45 = vld [vmem:[%s4540_s3 + $0x54] ss:$8 sps:$4 sm:$0xff]  }
  0x8a   :  { %596 = vmatprep.subr.bf16.mxu0 %v3114_v12  ;;  %v3827_v6 = vpack.c.bf16 %v203_v61, %v201_v60  ;;  %v3155_v12 = vld [vmem:[%s4540_s3 + $0x24] ss:$8 sps:$4 sm:$0xff]   ;;  %v205_v16 = vadd.f32 %v3791_v22, %v177_v7  ;;  %v178_v28 = vmul.f32 %v3804_v44, %v150_v19  ;;  %v3245_v60 = vld [vmem:[#allocation10] ss:$8 sps:$4 sm:$0xff]   ;;  %v3246_v61 = vld [vmem:[#allocation10 + $0x14] ss:$8 sps:$4 sm:$0xff]  }
  0x8b   :  { %618 = vmatprep.mubr.bf16.mxu0 %v3797_v30  ;;  %v327_v50 = vshll.u32 %v3797_v30, 16  ;;  %v3167_v53 = vld [vmem:[%s4540_s3 + $0x64] ss:$8 sps:$4 sm:$0xff]   ;;  %v3248_v0 = vld [vmem:[#allocation10 + $0x10] ss:$8 sps:$4 sm:$0xff]   ;;  %vm2288_vm6 = vcmask 1041409  }
  0x8c   :  { %v3243_v59 = vld [vmem:[#allocation10 + $0x4] ss:$8 sps:$4 sm:$0xff]   ;;  %v3251_v7 = vld [vmem:[#allocation10 + $0x20] ss:$8 sps:$4 sm:$0xff]   ;;  %v3180_v18 = vld [vmem:[%s4540_s3 + $0xb0] ss:$8 sps:$4 sm:$0xff]  }
  0x8d   :  { %597 = vmatpush1.bf16.msra.mxu0 %v3116_v13  ;;  %v200_v13 = vadd.f32 %v3809_v51, %v172_v3  ;;  %v3173_v63 = vld [vmem:[%s4540_s3 + $0x84] ss:$8 sps:$4 sm:$0xff]   ;;  %1581 = vmatprep.subr.bf16.mxu1 %v3243_v59  ;;  %v3171_v3 = vld [vmem:[%s4540_s3 + $0x80] ss:$8 sps:$4 sm:$0xff]   ;;  %vm416_vm4 = vsmask.f32 7424 }
  0x8e   :  { %598 = vmatprep.subr.bf16.mxu0 %v3117_v15  ;;  %v202_v15 = vadd.f32 %v3809_v51, %v174_v4  ;;  %1582 = vmatpush1.bf16.msra.mxu1 %v3245_v60  ;;  %v3249_v1 = vld [vmem:[#allocation10 + $0x24] ss:$8 sps:$4 sm:$0xff]   ;;  %v3176_v4 = vld [vmem:[%s4540_s3 + $0x94] ss:$8 sps:$4 sm:$0xff]   ;;  %vm4024_vm5 = vmand %vm415_vm3, %vm416_vm4  ;;  %vm2290_vm7 = vcmask 1042434   ;;  %vm2292_vm8 = vcmask 1043459  }
  0x8f   :  { %1583 = vmatprep.subr.bf16.mxu1 %v3246_v61  ;;  %v3179_v8 = vld [vmem:[%s4540_s3 + $0xa4] ss:$8 sps:$4 sm:$0xff]   ;;  %vm2423_vm9 = vcmask 31744   ;;  %vm2481_vm10 = vcmask 125952   ;;  %vm2545_vm11 = vcmask 130048  }
  0x90   :  { %v3185_v19 = vld [vmem:[%s4540_s3 + $0xc4] ss:$8 sps:$4 sm:$0xff]  }
  0x91   :  { %599 = vmatpush1.bf16.msra.mxu0 %v3119_v20  ;;  %v153_v20 = vld [vmem:[#allocation2 + $0x68] sm:$0xff] }
  0x92   :  { %600 = vmatprep.subr.bf16.mxu0 %v3120_v23  ;;  %v155_v23 = vld [vmem:[#allocation2 + $0x78] sm:$0xff]  ;;  %1584 = vmatpush1.bf16.msra.mxu1 %v3248_v0 }
  0x93   :  { %1585 = vmatprep.subr.bf16.mxu1 %v3249_v1 }
  0x95   :  { %601 = vmatpush1.bf16.msra.mxu0 %v3122_v26  ;;  %v3852_v26 = vpack.c.bf16 %v202_v15, %v200_v13  ;;  %v3177_v13 = vld [vmem:[%s4540_s3 + $0xa0] ss:$8 sps:$4 sm:$0xff]   ;;  %v3182_v15 = vld [vmem:[%s4540_s3 + $0xb4] ss:$8 sps:$4 sm:$0xff]  }
  0x96   :  { %602 = vmatprep.subr.bf16.mxu0 %v3123_v29  ;;  %v3856_v29 = vpack.c.bf16 %v207_v17, %v205_v16  ;;  %1586 = vmatpush1.bf16.msra.mxu1 %v3251_v7  ;;  %v3257_v16 = vld [vmem:[#allocation10 + $0x40] ss:$8 sps:$4 sm:$0xff]   ;;  %v3258_v17 = vld [vmem:[#allocation10 + $0x54] ss:$8 sps:$4 sm:$0xff]  }
  0x97   :  { %v334_v61 = vshll.u32 %v3852_v26, 16 }
  0x98   :  { %v355_v1 = vshll.u32 %v3856_v29, 16 }
  0x99   :  { %603 = vmatpush1.bf16.msra.mxu0 %v3125_v31  ;;  %v181_v31 = vmul.f32 %v3788_v21, %v153_v20  ;;  %v3260_v20 = vld [vmem:[#allocation10 + $0x50] ss:$8 sps:$4 sm:$0xff]  }
  0x9a   :  { %604 = vmatprep.subr.bf16.mxu0 %v3126_v32  ;;  %v183_v32 = vmul.f32 %v3788_v21, %v155_v23  ;;  %v3261_v23 = vld [vmem:[#allocation10 + $0x64] ss:$8 sps:$4 sm:$0xff]  }
  0x9b   :  { %v209_v21 = vadd.f32 %v3791_v22, %v181_v31  ;;  %v317_v31 = vshrl.u32 %v3820_v2, 16 }
  0x9d   :  { %605 = vmatpush1.bf16.msra.mxu0 %v3128_v33  ;;  %v3156_v33 = vld [vmem:[%s4540_s3 + $0x30] ss:$8 sps:$4 sm:$0xff]  }
  0x9e   :  { %606 = vmatprep.subr.bf16.mxu0 %v3129_v34  ;;  %v152_v34 = vld [vmem:[#allocation2 + $0x60] sm:$0xff] }
  0x9f   :  { %v180_v47 = vmul.f32 %v3804_v44, %v152_v34  ;;  %v338_v34 = vshrl.u32 %v3827_v6, 16 }
  0xa1   :  { %607 = vmatpush1.bf16.msra.mxu0 %v3131_v35  ;;  %v154_v35 = vld [vmem:[#allocation2 + $0x70] sm:$0xff] }
  0xa2   :  { %608 = vmatprep.subr.bf16.mxu0 %v3132_v36  ;;  %v3161_v36 = vld [vmem:[%s4540_s3 + $0x44] ss:$8 sps:$4 sm:$0xff]  }
  0xa5   :  { %609 = vmatpush1.bf16.msra.mxu0 %v3134_v37  ;;  %v204_v37 = vadd.f32 %v3809_v51, %v176_v27  ;;  %v3263_v27 = vld [vmem:[#allocation10 + $0x60] ss:$8 sps:$4 sm:$0xff]  }
  0xa6   :  { %610 = vmatprep.subr.bf16.mxu0 %v3135_v38  ;;  %v206_v38 = vadd.f32 %v3809_v51, %v178_v28  ;;  %v3264_v28 = vld [vmem:[#allocation10 + $0x74] ss:$8 sps:$4 sm:$0xff]  }
  0xa8   :  { %v3883_v46 = vpack.c.bf16 %v206_v38, %v204_v37  ;;  %v320_v37 = vshll.u32 %v3820_v2, 16  ;;  %v3189_v38 = vld [vmem:[%s4540_s3 + $0xe0] ss:$8 sps:$4 sm:$0xff]  }
  0xa9   :  { %611 = vmatpush1.bf16.msra.mxu0 %v3137_v40  ;;  %v211_v40 = vadd.f32 %v3791_v22, %v183_v32  ;;  %v182_v22 = vmul.f32 %v3804_v44, %v154_v35  ;;  %v208_v44 = vadd.f32 %v3809_v51, %v180_v47  ;;  %v3186_v32 = vld [vmem:[%s4540_s3 + $0xd0] ss:$8 sps:$4 sm:$0xff]   ;;  %v3269_v47 = vld [vmem:[#allocation10 + $0x80] ss:$8 sps:$4 sm:$0xff]  }
  0xaa   :  { %612 = vmatprep.subr.bf16.mxu0 %v3138_v41  ;;  %v324_v41 = vshrl.u32 %v3797_v30, 16  ;;  %v3266_v35 = vld [vmem:[#allocation10 + $0x70] ss:$8 sps:$4 sm:$0xff]   ;;  %v3221_v30 = vld [vmem:[#allocation7 + $0x84] ss:$8 sps:$4 sm:$0xff]  }
  0xab   :  { %v3887_v48 = vpack.c.bf16 %v211_v40, %v209_v21  ;;  %v210_v54 = vadd.f32 %v3809_v51, %v182_v22  ;;  %v319_v21 = vrot.slane %v317_v31, 7  ;;  %v3194_v40 = vld [vmem:[%s4540_s3 + $0xf4] ss:$8 sps:$4 sm:$0xff]  }
  0xac   :  { %v326_v49 = vrot.slane %v324_v41, 7  ;;  %v3270_v22 = vld [vmem:[#allocation10 + $0x94] ss:$8 sps:$4 sm:$0xff]  }
  0xad   :  { %613 = vmatpush1.bf16.msra.mxu0 %v3140_v42  ;;  %v3159_v42 = vld [vmem:[%s4540_s3 + $0x40] ss:$8 sps:$4 sm:$0xff]   ;;  %v3910_v58 = vpack.c.bf16 %v210_v54, %v208_v44  ;;  %v3197_v44 = vld [vmem:[#allocation7 + $0x4] ss:$8 sps:$4 sm:$0xff]  }
  0xae   :  { %614 = vmatprep.subr.bf16.mxu0 %v3141_v43  ;;  %v3369_v43 = vld [vmem:[#allocation11 + $0xa0] ss:$8 sps:$4 sm:$0xff]  }
  0xb1   :  { %615 = vmatpush1.bf16.msra.mxu0 %v3143_v52  ;;  %v3162_v52 = vld [vmem:[%s4540_s3 + $0x50] ss:$8 sps:$4 sm:$0xff]  }
  0xb2   :  { %616 = vmatprep.subr.bf16.mxu0 %v3144_v55  ;;  %v329_v55 = vor.u32 %v327_v50, %v326_v49  ;;  %v3192_v49 = vld [vmem:[%s4540_s3 + $0xf0] ss:$8 sps:$4 sm:$0xff]  }
  0xb4   :  { %v384_v51 = vsel %vm3876_vm2, 0, %v329_v55  ;;  %v352_v55 = vshrl.u32 %v3856_v29, 16 }
  0xb5   :  { %617 = vmatpush1.bf16.msra.mxu0 %v3146_v56  ;;  %v3165_v56 = vld [vmem:[%s4540_s3 + $0x60] ss:$8 sps:$4 sm:$0xff]  }
  0xb6   :  { %819 = vmatprep.subr.bf16.mxu0 %v3149_v57  ;;  %v3170_v57 = vld [vmem:[%s4540_s3 + $0x74] ss:$8 sps:$4 sm:$0xff]   ;;  %v354_v0 = vrot.slane %v352_v55, 7 }
  0xb8   :  { %619 = vmatmul.mubr.bf16.vlgmr.msra.gmra.mrb[0].mxu0 %v3820_v2 }
  0xb9   :  { %820 = vmatpush1.bf16.msra.mxu0 %v3147_v5  ;;  %628 = vmatprep.mubr.bf16.mxu0 %v3827_v6  ;;  %v3174_v5 = vld [vmem:[%s4540_s3 + $0x90] ss:$8 sps:$4 sm:$0xff]  }
  0xba   :  { %821 = vmatprep.subr.bf16.mxu0 %v3152_v9  ;;  %v3252_v9 = vld [vmem:[#allocation10 + $0x34] ss:$8 sps:$4 sm:$0xff]  }
  0xbb   :  { %1587 = vmatprep.subr.bf16.mxu1 %v3252_v9  ;;  %v3203_v9 = vld [vmem:[#allocation7 + $0x24] ss:$8 sps:$4 sm:$0xff]  }
  0xbd   :  { %822 = vmatpush1.bf16.msra.mxu0 %v3150_v10  ;;  %v3254_v10 = vld [vmem:[#allocation10 + $0x30] ss:$8 sps:$4 sm:$0xff]  }
  0xbe   :  { %823 = vmatprep.subr.bf16.mxu0 %v3155_v12  ;;  %v3255_v12 = vld [vmem:[#allocation10 + $0x44] ss:$8 sps:$4 sm:$0xff]   ;;  %1588 = vmatpush1.bf16.msra.mxu1 %v3254_v10  ;;  %v357_v10 = vor.u32 %v355_v1, %v354_v0  ;;  %v3222_v0 = vld [vmem:[#allocation7 + $0x90] ss:$8 sps:$4 sm:$0xff]  }
  0xbf   :  { %1589 = vmatprep.subr.bf16.mxu1 %v3255_v12  ;;  %v366_v12 = vshrl.u32 %v3887_v48, 16 }
  0xc0   :  { %629 = vmatmul.mubr.bf16.gmra.mrb[4].mxu0 %v3852_v26 }
  0xc1   :  { %824 = vmatpush1.bf16.msra.mxu0 %v3153_v24  ;;  %638 = vmatprep.mubr.bf16.mxu0 %v3856_v29  ;;  %v3183_v24 = vld [vmem:[%s4540_s3 + $0xc0] ss:$8 sps:$4 sm:$0xff]  }
  0xc2   :  { %825 = vmatprep.subr.bf16.mxu0 %v3158_v25  ;;  %1590 = vmatpush1.bf16.msra.mxu1 %v3257_v16  ;;  %v3188_v25 = vld [vmem:[%s4540_s3 + $0xd4] ss:$8 sps:$4 sm:$0xff]   ;;  %v3201_v16 = vld [vmem:[#allocation7 + $0x20] ss:$8 sps:$4 sm:$0xff]  }
  0xc3   :  { %1591 = vmatprep.subr.bf16.mxu1 %v3258_v17 }
  0xc5   :  { %826 = vmatpush1.bf16.msra.mxu0 %v3156_v33  ;;  %v3191_v33 = vld [vmem:[%s4540_s3 + $0xe4] ss:$8 sps:$4 sm:$0xff]  }
  0xc6   :  { %827 = vmatprep.subr.bf16.mxu0 %v3161_v36  ;;  %1592 = vmatpush1.bf16.msra.mxu1 %v3260_v20  ;;  %v3267_v36 = vld [vmem:[#allocation10 + $0x84] ss:$8 sps:$4 sm:$0xff]   ;;  %v3206_v20 = vld [vmem:[#allocation7 + $0x34] ss:$8 sps:$4 sm:$0xff]  }
  0xc7   :  { %1593 = vmatprep.subr.bf16.mxu1 %v3261_v23  ;;  %v388_v23 = vsel %vm3876_vm2, 0, %v357_v10  ;;  %v3231_v10 = vld [vmem:[#allocation7 + $0xc0] ss:$8 sps:$4 sm:$0xff]  }
  0xc8   :  { %639 = vmatmul.mubr.bf16.gmra.mrb[8].mxu0 %v3883_v46 }
  0xc9   :  { %828 = vmatpush1.bf16.msra.mxu0 %v3159_v42  ;;  %648 = vmatprep.mubr.bf16.mxu0 %v3887_v48  ;;  %v340_v42 = vrot.slane %v338_v34, 7 }
  0xca   :  { %829 = vmatprep.subr.bf16.mxu0 %v3164_v45  ;;  %1594 = vmatpush1.bf16.msra.mxu1 %v3263_v27  ;;  %v341_v45 = vshll.u32 %v3827_v6, 16  ;;  %v3281_v27 = vld [vmem:[#allocation10 + $0xc0] ss:$8 sps:$4 sm:$0xff]  }
  0xcb   :  { %1595 = vmatprep.subr.bf16.mxu1 %v3264_v28  ;;  %v3204_v28 = vld [vmem:[#allocation7 + $0x30] ss:$8 sps:$4 sm:$0xff]  }
  0xcc   :  { %v343_v54 = vor.u32 %v341_v45, %v340_v42  ;;  %v362_v42 = vshll.u32 %v3910_v58, 16 }
  0xcd   :  { %830 = vmatpush1.bf16.msra.mxu0 %v3162_v52  ;;  %v322_v52 = vor.u32 %v320_v37, %v319_v21 }
  0xce   :  { %831 = vmatprep.subr.bf16.mxu0 %v3167_v53  ;;  %1596 = vmatpush1.bf16.msra.mxu1 %v3266_v35  ;;  %v331_v53 = vshrl.u32 %v3852_v26, 16  ;;  %v3209_v35 = vld [vmem:[#allocation7 + $0x44] ss:$8 sps:$4 sm:$0xff]  }
  0xcf   :  { %1597 = vmatprep.subr.bf16.mxu1 %v3267_v36  ;;  %v383_v59 = vsel %vm3876_vm2, 0, %v322_v52  ;;  %v3210_v52 = vld [vmem:[#allocation7 + $0x50] ss:$8 sps:$4 sm:$0xff]  }
  0xd0   :  { %649 = vmatmul.mubr.bf16.gmra.mrb[12].mxu0 %v3910_v58  ;;  %v333_v60 = vrot.slane %v331_v53, 7 }
  0xd1   :  { %832 = vmatpush1.bf16.msra.mxu0 %v3165_v56  ;;  %851 = vmatprep.mubr.bf16.mxu0 %v384_v51  ;;  %v3272_v56 = vld [vmem:[#allocation10 + $0x90] ss:$8 sps:$4 sm:$0xff]   ;;  %v3195_v51 = vld [vmem:[#allocation7] ss:$8 sps:$4 sm:$0xff]  }
  0xd2   :  { %833 = vmatprep.subr.bf16.mxu0 %v3170_v57  ;;  %1598 = vmatpush1.bf16.msra.mxu1 %v3269_v47  ;;  %v3273_v57 = vld [vmem:[#allocation10 + $0xa4] ss:$8 sps:$4 sm:$0xff]   ;;  %v336_v7 = vor.u32 %v334_v61, %v333_v60  ;;  %v3212_v47 = vld [vmem:[#allocation7 + $0x54] ss:$8 sps:$4 sm:$0xff]  }
  0xd3   :  { %1599 = vmatprep.subr.bf16.mxu1 %v3270_v22 }
  0xd4   :  { %v385_v17 = vsel %vm3876_vm2, 0, %v336_v7  ;;  %v3228_v7 = vld [vmem:[#allocation7 + $0xb0] ss:$8 sps:$4 sm:$0xff]  }
  0xd5   :  { %834 = vmatpush1.bf16.msra.mxu0 %v3168_v62  ;;  %v3200_v62 = vld [vmem:[#allocation7 + $0x14] ss:$8 sps:$4 sm:$0xff]  }
  0xd6   :  { %835 = vmatprep.subr.bf16.mxu0 %v3173_v63  ;;  %v386_v63 = vsel %vm3876_vm2, 0, %v343_v54  ;;  %1600 = vmatpush1.bf16.msra.mxu1 %v3272_v56  ;;  %v3215_v54 = vld [vmem:[#allocation7 + $0x64] ss:$8 sps:$4 sm:$0xff]  }
  0xd7   :  { %1601 = vmatprep.subr.bf16.mxu1 %v3273_v57 }
  0xd9   :  { %836 = vmatpush1.bf16.msra.mxu0 %v3171_v3  ;;  %v3275_v3 = vld [vmem:[#allocation10 + $0xa0] ss:$8 sps:$4 sm:$0xff]  }
  0xda   :  { %837 = vmatprep.subr.bf16.mxu0 %v3176_v4  ;;  %v3276_v4 = vld [vmem:[#allocation10 + $0xb4] ss:$8 sps:$4 sm:$0xff]   ;;  %1602 = vmatpush1.bf16.msra.mxu1 %v3275_v3  ;;  %v3227_v3 = vld [vmem:[#allocation7 + $0xa4] ss:$8 sps:$4 sm:$0xff]  }
  0xdb   :  { %1603 = vmatprep.subr.bf16.mxu1 %v3276_v4  ;;  %v3225_v4 = vld [vmem:[#allocation7 + $0xa0] ss:$8 sps:$4 sm:$0xff]  }
  0xdd   :  { %838 = vmatpush1.bf16.msra.mxu0 %v3174_v5  ;;  %v3198_v5 = vld [vmem:[#allocation7 + $0x10] ss:$8 sps:$4 sm:$0xff]  }
  0xde   :  { %839 = vmatprep.subr.bf16.mxu0 %v3179_v8  ;;  %v345_v8 = vshrl.u32 %v3883_v46, 16 }
  0xe1   :  { %840 = vmatpush1.bf16.msra.mxu0 %v3177_v13  ;;  %v3278_v13 = vld [vmem:[#allocation10 + $0xb0] ss:$8 sps:$4 sm:$0xff]  }
  0xe2   :  { %841 = vmatprep.subr.bf16.mxu0 %v3182_v15  ;;  %v3279_v15 = vld [vmem:[#allocation10 + $0xc4] ss:$8 sps:$4 sm:$0xff]   ;;  %1604 = vmatpush1.bf16.msra.mxu1 %v3278_v13  ;;  %v3236_v13 = vld [vmem:[#allocation7 + $0xd4] ss:$8 sps:$4 sm:$0xff]  }
  0xe3   :  { %1605 = vmatprep.subr.bf16.mxu1 %v3279_v15  ;;  %v3234_v15 = vld [vmem:[#allocation7 + $0xd0] ss:$8 sps:$4 sm:$0xff]  }
  0xe5   :  { %842 = vmatpush1.bf16.msra.mxu0 %v3180_v18  ;;  %v347_v18 = vrot.slane %v345_v8, 7 }
  0xe6   :  { %843 = vmatprep.subr.bf16.mxu0 %v3185_v19  ;;  %v348_v19 = vshll.u32 %v3883_v46, 16  ;;  %1606 = vmatpush1.bf16.msra.mxu1 %v3281_v27 }
  0xe9   :  { %844 = vmatpush1.bf16.msra.mxu0 %v3183_v24  ;;  %v368_v24 = vrot.slane %v366_v12, 7 }
  0xea   :  { %845 = vmatprep.subr.bf16.mxu0 %v3188_v25  ;;  %v369_v25 = vshll.u32 %v3887_v48, 16  ;;  %v3282_v48 = vld [vmem:[#allocation10 + $0xd4] ss:$8 sps:$4 sm:$0xff]  }
  0xeb   :  { %1607 = vmatprep.subr.bf16.mxu1 %v3282_v48 }
  0xec   :  { %v371_v36 = vor.u32 %v369_v25, %v368_v24  ;;  %v3240_v24 = vld [vmem:[#allocation7 + $0xf0] ss:$8 sps:$4 sm:$0xff]  }
  0xed   :  { %846 = vmatpush1.bf16.msra.mxu0 %v3186_v32  ;;  %v350_v32 = vor.u32 %v348_v19, %v347_v18  ;;  %v391_v18 = vrot.slane %v320_v37, 1  ;;  %v395_v37 = vrot.slane %v334_v61, 1 }
  0xee   :  { %847 = vmatprep.subr.bf16.mxu0 %v3191_v33  ;;  %v359_v33 = vshrl.u32 %v3910_v58, 16  ;;  %v390_v22 = vsel %vm3876_vm2, 0, %v371_v36  ;;  %v3287_v36 = vld [vmem:[#allocation10 + $0xe0] ss:$8 sps:$4 sm:$0xff]  }
  0xef   :  { %v387_v21 = vsel %vm3876_vm2, 0, %v350_v32  ;;  %v392_v27 = vor.u32 %v391_v18, %v317_v31  ;;  %v396_v2 = vor.u32 %v395_v37, %v331_v53  ;;  %v1141_v58 = vld [vmem:[%s4543_s6] sm:$0x3] }
  0xf0   :  { %v3291_v18 = vld [vmem:[#allocation8] ss:$8 sps:$4 sm:$0xff]  }
  0xf1   :  { %848 = vmatpush1.bf16.msra.mxu0 %v3189_v38  ;;  %v3207_v38 = vld [vmem:[#allocation7 + $0x40] ss:$8 sps:$4 sm:$0xff]   ;;  %v418_v32 = vsel %vm4024_vm5, %v392_v27, 0  ;;  %v420_v31 = vsel %vm4024_vm5, %v396_v2, 0 }
  0xf2   :  { %849 = vmatprep.subr.bf16.mxu0 %v3194_v40  ;;  %v361_v40 = vrot.slane %v359_v33, 7 }
  0xf5   :  { %850 = vmatpush1.bf16.msra.mxu0 %v3192_v49  ;;  %v393_v49 = vrot.slane %v327_v50, 1  ;;  %v3213_v50 = vld [vmem:[#allocation7 + $0x60] ss:$8 sps:$4 sm:$0xff]  }
  0xf6   :  { %1052 = vmatprep.subr.bf16.mxu0 %v3197_v44  ;;  %v364_v44 = vor.u32 %v362_v42, %v361_v40  ;;  %v3293_v40 = vld [vmem:[#allocation8 + $0x4] ss:$8 sps:$4 sm:$0xff]  }
  0xf7   :  { %v394_v56 = vor.u32 %v393_v49, %v324_v41  ;;  %v3219_v41 = vld [vmem:[#allocation7 + $0x80] ss:$8 sps:$4 sm:$0xff]  }
  0xf8   :  { %852 = vmatmul.mubr.bf16.vlgmr.msra.gmra.mrb[0].mxu0 %v383_v59  ;;  %v3218_v59 = vld [vmem:[#allocation7 + $0x74] ss:$8 sps:$4 sm:$0xff]  }
  0xf9   :  { %1053 = vmatpush1.bf16.msra.mxu0 %v3195_v51  ;;  %861 = vmatprep.mubr.bf16.mxu0 %v386_v63  ;;  %v389_v51 = vsel %vm3876_vm2, 0, %v364_v44  ;;  %v419_v60 = vsel %vm4024_vm5, %v394_v56, 0  ;;  %v3224_v63 = vld [vmem:[#allocation7 + $0x94] ss:$8 sps:$4 sm:$0xff]  }
  0xfa   :  { %1054 = vmatprep.subr.bf16.mxu0 %v3200_v62  ;;  %v3216_v62 = vld [vmem:[#allocation7 + $0x70] ss:$8 sps:$4 sm:$0xff]  }
  0xfd   :  { %1055 = vmatpush1.bf16.msra.mxu0 %v3198_v5  ;;  %v3230_v5 = vld [vmem:[#allocation7 + $0xb4] ss:$8 sps:$4 sm:$0xff]  }
  0xfe   :  { %1056 = vmatprep.subr.bf16.mxu0 %v3203_v9  ;;  %v3233_v9 = vld [vmem:[#allocation7 + $0xc4] ss:$8 sps:$4 sm:$0xff]  }
 0x100   :  { %862 = vmatmul.mubr.bf16.gmra.mrb[4].mxu0 %v385_v17  ;;  %v3237_v17 = vld [vmem:[#allocation7 + $0xe0] ss:$8 sps:$4 sm:$0xff]  }
 0x101   :  { %1057 = vmatpush1.bf16.msra.mxu0 %v3201_v16  ;;  %871 = vmatprep.mubr.bf16.mxu0 %v388_v23  ;;  %v3239_v16 = vld [vmem:[#allocation7 + $0xe4] ss:$8 sps:$4 sm:$0xff]   ;;  %v397_v23 = vrot.slane %v341_v45, 1  ;;  %v401_v45 = vrot.slane %v355_v1, 1  ;;  %v405_v1 = vrot.slane %v369_v25, 1 }
 0x102   :  { %1058 = vmatprep.subr.bf16.mxu0 %v3206_v20  ;;  %v3242_v20 = vld [vmem:[#allocation7 + $0xf4] ss:$8 sps:$4 sm:$0xff]  }
 0x103   :  { %v402_v6 = vor.u32 %v401_v45, %v352_v55  ;;  %v406_v29 = vor.u32 %v405_v1, %v366_v12  ;;  %v403_v55 = vrot.slane %v362_v42, 1  ;;  %v3285_v12 = vld [vmem:[#allocation10 + $0xe4] ss:$8 sps:$4 sm:$0xff]   ;;  %v4081_v42 = vrot.slane %v1141_v58, %v3801_v39 }
 0x105   :  { %1059 = vmatpush1.bf16.msra.mxu0 %v3204_v28  ;;  %v398_v28 = vor.u32 %v397_v23, %v338_v34  ;;  %v399_v34 = vrot.slane %v348_v19, 1  ;;  %v423_v61 = vsel %vm4024_vm5, %v402_v6, 0  ;;  %v425_v19 = vsel %vm4024_vm5, %v406_v29, 0 }
 0x106   :  { %1060 = vmatprep.subr.bf16.mxu0 %v3209_v35  ;;  %v404_v25 = vor.u32 %v403_v55, %v359_v33  ;;  %v1169_v33 = vld [vmem:[%s4544_s7] sm:$0x3] }
 0x107   :  { %v421_v35 = vsel %vm4024_vm5, %v398_v28, 0  ;;  %v400_v26 = vor.u32 %v399_v34, %v345_v8  ;;  %v3284_v8 = vld [vmem:[#allocation10 + $0xd0] ss:$8 sps:$4 sm:$0xff]   ;;  %v3296_v28 = vld [vmem:[#allocation8 + $0x14] ss:$8 sps:$4 sm:$0xff]  }
 0x108   :  { %872 = vmatmul.mubr.bf16.gmra.mrb[8].mxu0 %v387_v21  ;;  %v424_v46 = vsel %vm4024_vm5, %v404_v25, 0  ;;  %1608 = vmatpush1.bf16.msra.mxu1 %v3284_v8  ;;  %v3290_v21 = vld [vmem:[#allocation10 + $0xf0] ss:$8 sps:$4 sm:$0xff]  }
 0x109   :  { %1061 = vmatpush1.bf16.msra.mxu0 %v3207_v38  ;;  %881 = vmatprep.mubr.bf16.mxu0 %v390_v22  ;;  %v422_v53 = vsel %vm4024_vm5, %v400_v26, 0  ;;  %v3288_v38 = vld [vmem:[#allocation10 + $0xf4] ss:$8 sps:$4 sm:$0xff]   ;;  %v4087_v22 = vrot.slane %v1169_v33, %v3801_v39  ;;  %v3294_v34 = vld [vmem:[#allocation8 + $0x10] ss:$8 sps:$4 sm:$0xff]  }
 0x10a   :  { %1062 = vmatprep.subr.bf16.mxu0 %v3212_v47  ;;  %1609 = vmatprep.subr.bf16.mxu1 %v3285_v12  ;;  %v4084_v47 = vrot.slane %v1141_v58, %v3779_v14  ;;  %v3297_v58 = vld [vmem:[#allocation8 + $0x20] ss:$8 sps:$4 sm:$0xff]  }
 0x10c   :  { %1610 = vmatpush1.bf16.msra.mxu1 %v3287_v36 }
 0x10d   :  { %1063 = vmatpush1.bf16.msra.mxu0 %v3210_v52  ;;  %1611 = vmatprep.subr.bf16.mxu1 %v3288_v38  ;;  %v4090_v52 = vrot.slane %v1169_v33, %v3779_v14 }
 0x10e   :  { %1064 = vmatprep.subr.bf16.mxu0 %v3215_v54 }
 0x110   :  { %882 = vmatmul.mubr.bf16.gmra.mrb[12].mxu0 %v389_v51  ;;  %1612 = vmatpush1.bf16.msra.mxu1 %v3290_v21 }
 0x111   :  { %1065 = vmatpush1.bf16.msra.mxu0 %v3213_v50  ;;  %1084 = vmatprep.mubr.bf16.mxu0 %v419_v60 }
 0x112   :  { %1066 = vmatprep.subr.bf16.mxu0 %v3218_v59  ;;  %1814 = vmatprep.subr.bf16.mxu1 %v3293_v40 }
 0x115   :  { %1067 = vmatpush1.bf16.msra.mxu0 %v3216_v62 }
 0x116   :  { %1068 = vmatprep.subr.bf16.mxu0 %v3221_v30 }
 0x119   :  { %1069 = vmatpush1.bf16.msra.mxu0 %v3219_v41 }
 0x11a   :  { %1070 = vmatprep.subr.bf16.mxu0 %v3224_v63 }
 0x11d   :  { %1071 = vmatpush1.bf16.msra.mxu0 %v3222_v0 }
 0x11e   :  { %1072 = vmatprep.subr.bf16.mxu0 %v3227_v3 }
 0x121   :  { %1073 = vmatpush1.bf16.msra.mxu0 %v3225_v4 }
 0x122   :  { %1074 = vmatprep.subr.bf16.mxu0 %v3230_v5 }
 0x125   :  { %1075 = vmatpush1.bf16.msra.mxu0 %v3228_v7 }
 0x126   :  { %1076 = vmatprep.subr.bf16.mxu0 %v3233_v9 }
 0x129   :  { %1077 = vmatpush1.bf16.msra.mxu0 %v3231_v10 }
 0x12a   :  { %1078 = vmatprep.subr.bf16.mxu0 %v3236_v13 }
 0x12d   :  { %1079 = vmatpush1.bf16.msra.mxu0 %v3234_v15 }
 0x12e   :  { %1080 = vmatprep.subr.bf16.mxu0 %v3239_v16 }
 0x131   :  { %1081 = vmatpush1.bf16.msra.mxu0 %v3237_v17 }
 0x132   :  { %1082 = vmatprep.subr.bf16.mxu0 %v3242_v20 }
 0x135   :  { %1083 = vmatpush1.bf16.msra.mxu0 %v3240_v24 }
 0x138   :  { %1085 = vmatmul.mubr.bf16.vlgmr.msra.gmra.mrb[0].mxu0 %v418_v32 }
 0x139   :  { %1094 = vmatprep.mubr.bf16.mxu0 %v421_v35 }
 0x140   :  { %1095 = vmatmul.mubr.bf16.gmra.mrb[4].mxu0 %v420_v31 }
 0x141   :  { %1104 = vmatprep.mubr.bf16.mxu0 %v423_v61 }
 0x148   :  { %1105 = vmatmul.mubr.bf16.gmra.mrb[8].mxu0 %v422_v53  ;;  %v3299_v53 = vld [vmem:[#allocation8 + $0x24] ss:$8 sps:$4 sm:$0xff]  }
 0x149   :  { %1114 = vmatprep.mubr.bf16.mxu0 %v425_v19 }
 0x150   :  { %1115 = vmatmul.mubr.bf16.gmra.mrb[12].mxu0 %v424_v46 }
 0x20b   :  { %v1086_v49 = vpop.f32.mrb[0].mxu0 }
 0x20c   :  { %v1153_v44 = vmul.f32 %v4081_v42, %v1086_v49  ;;  %v1088_v54 = vpop.f32.mrb[1].mxu0 }
 0x20d   :  { %v1154_v56 = vmul.f32 %v4084_v47, %v1088_v54  ;;  %v1090_v50 = vpop.f32.mrb[2].mxu0  ;;  %v3302_v54 = vld [vmem:[#allocation8 + $0x34] ss:$8 sps:$4 sm:$0xff]  }
 0x20e   :  { %v1181_v51 = vadd.f32 %v4087_v22, %v1153_v44  ;;  %v1155_v59 = vmul.f32 %v4081_v42, %v1090_v50  ;;  %v1092_v60 = vpop.f32.mrb[3].mxu0 }
 0x20f   :  { %v1182_v62 = vadd.f32 %v4090_v52, %v1154_v56  ;;  %v1156_v30 = vmul.f32 %v4084_v47, %v1092_v60 }
 0x210   :  { %v1183_v41 = vadd.f32 %v4087_v22, %v1155_v59  ;;  %v1197_v0 = vmax.f32 %v1181_v51, 0.0 }
 0x211   :  { %v1184_v63 = vadd.f32 %v4090_v52, %v1156_v30  ;;  %v1198_v4 = vmax.f32 %v1182_v62, 0.0 }
 0x212   :  { %v1199_v3 = vmax.f32 %v1183_v41, 0.0 }
 0x213   :  { %v1200_v5 = vmax.f32 %v1184_v63, 0.0  ;;  %v1096_v7 = vpop.f32.mrb[4].mxu0  ;;  %v3300_v63 = vld [vmem:[#allocation8 + $0x30] ss:$8 sps:$4 sm:$0xff]  }
 0x214   :  { %v1157_v9 = vmul.f32 %v4081_v42, %v1096_v7  ;;  %v1098_v10 = vpop.f32.mrb[5].mxu0  ;;  %v4101_v13 = vpack.c.bf16 %v1199_v3, %v1197_v0  ;;  %v3305_v7 = vld [vmem:[#allocation8 + $0x44] ss:$8 sps:$4 sm:$0xff]  }
 0x215   :  { %v1158_v15 = vmul.f32 %v4084_v47, %v1098_v10  ;;  %v1100_v16 = vpop.f32.mrb[6].mxu0  ;;  %v4104_v17 = vpack.c.bf16 %v1200_v5, %v1198_v4 }
 0x216   :  { %v1185_v20 = vadd.f32 %v4087_v22, %v1157_v9  ;;  %v1159_v23 = vmul.f32 %v4081_v42, %v1100_v16  ;;  %v1102_v24 = vpop.f32.mrb[7].mxu0  ;;  %v1321_v27 = vshll.u32 %v4101_v13, 16  ;;  %v1318_v2 = vshrl.u32 %v4101_v13, 16 }
 0x217   :  { %v1186_v32 = vadd.f32 %v4090_v52, %v1158_v15  ;;  %v1160_v37 = vmul.f32 %v4084_v47, %v1102_v24  ;;  %1613 = vmatprep.mubr.bf16.mxu1 %v4104_v17  ;;  %v1328_v35 = vshll.u32 %v4104_v17, 16  ;;  %v1325_v61 = vshrl.u32 %v4104_v17, 16 }
 0x218   :  { %v1187_v45 = vadd.f32 %v4087_v22, %v1159_v23  ;;  %1614 = vmatmul.mubr.bf16.vlgmr.msra.gmra.mrb[0].mxu1 %v4101_v13  ;;  %v1389_v6 = vrot.slane %v1321_v27, 1  ;;  %v1201_v26 = vmax.f32 %v1185_v20, 0.0 }
 0x219   :  { %v1188_v31 = vadd.f32 %v4090_v52, %v1160_v37  ;;  %1815 = vmatpush1.bf16.msra.mxu1 %v3291_v18  ;;  %v1391_v1 = vrot.slane %v1328_v35, 1  ;;  %v1202_v19 = vmax.f32 %v1186_v32, 0.0 }
 0x21a   :  { %v1203_v29 = vmax.f32 %v1187_v45, 0.0  ;;  %1816 = vmatprep.subr.bf16.mxu1 %v3296_v28  ;;  %v4124_v55 = vor.u32 %v1389_v6, %v1318_v2  ;;  %v3303_v45 = vld [vmem:[#allocation8 + $0x40] ss:$8 sps:$4 sm:$0xff]  }
 0x21b   :  { %v1204_v25 = vmax.f32 %v1188_v31, 0.0  ;;  %v1106_v46 = vpop.f32.mrb[8].mxu0  ;;  %v4128_v48 = vor.u32 %v1391_v1, %v1325_v61  ;;  %v3308_v1 = vld [vmem:[#allocation8 + $0x54] ss:$8 sps:$4 sm:$0xff]  }
 0x21c   :  { %v1161_v8 = vmul.f32 %v4081_v42, %v1106_v46  ;;  %v1108_v12 = vpop.f32.mrb[9].mxu0  ;;  %v4131_v36 = vpack.c.bf16 %v1203_v29, %v1201_v26 }
 0x21d   :  { %v1162_v38 = vmul.f32 %v4084_v47, %v1108_v12  ;;  %1817 = vmatpush1.bf16.msra.mxu1 %v3294_v34  ;;  %v1110_v21 = vpop.f32.mrb[10].mxu0  ;;  %v4134_v40 = vpack.c.bf16 %v1204_v25, %v1202_v19 }
 0x21e   :  { %v1189_v33 = vadd.f32 %v4087_v22, %v1161_v8  ;;  %v1163_v49 = vmul.f32 %v4081_v42, %v1110_v21  ;;  %v1112_v44 = vpop.f32.mrb[11].mxu0  ;;  %1818 = vmatprep.subr.bf16.mxu1 %v3299_v53  ;;  %v1335_v56 = vshll.u32 %v4131_v36, 16  ;;  %v1332_v62 = vshrl.u32 %v4131_v36, 16 }
 0x21f   :  { %v1190_v50 = vadd.f32 %v4090_v52, %v1162_v38  ;;  %v1164_v51 = vmul.f32 %v4084_v47, %v1112_v44  ;;  %1623 = vmatprep.mubr.bf16.mxu1 %v4134_v40  ;;  %v1342_v59 = vshll.u32 %v4134_v40, 16  ;;  %v1339_v0 = vshrl.u32 %v4134_v40, 16  ;;  %v3347_v40 = vld [vmem:[#allocation11 + $0x24] ss:$8 sps:$4 sm:$0xff]  }
 0x220   :  { %v1191_v60 = vadd.f32 %v4087_v22, %v1163_v49  ;;  %1624 = vmatmul.mubr.bf16.gmra.mrb[4].mxu1 %v4131_v36  ;;  %v1393_v30 = vrot.slane %v1335_v56, 1  ;;  %v1205_v4 = vmax.f32 %v1189_v33, 0.0  ;;  %v3311_v33 = vld [vmem:[#allocation8 + $0x64] ss:$8 sps:$4 sm:$0xff]  }
 0x221   :  { %v1192_v41 = vadd.f32 %v4090_v52, %v1164_v51  ;;  %1819 = vmatpush1.bf16.msra.mxu1 %v3297_v58  ;;  %v1395_v3 = vrot.slane %v1342_v59, 1  ;;  %v1206_v10 = vmax.f32 %v1190_v50, 0.0 }
 0x222   :  { %v1207_v5 = vmax.f32 %v1191_v60, 0.0  ;;  %1820 = vmatprep.subr.bf16.mxu1 %v3302_v54  ;;  %v4154_v9 = vor.u32 %v1393_v30, %v1332_v62  ;;  %v3309_v60 = vld [vmem:[#allocation8 + $0x60] ss:$8 sps:$4 sm:$0xff]   ;;  %v3314_v30 = vld [vmem:[#allocation8 + $0x74] ss:$8 sps:$4 sm:$0xff]  }
 0x223   :  { %v1208_v15 = vmax.f32 %v1192_v41, 0.0  ;;  %v1116_v16 = vpop.f32.mrb[12].mxu0  ;;  %v4158_v18 = vor.u32 %v1395_v3, %v1339_v0 }
 0x224   :  { %v1165_v20 = vmul.f32 %v4081_v42, %v1116_v16  ;;  %v1118_v23 = vpop.f32.mrb[13].mxu0  ;;  %v4161_v24 = vpack.c.bf16 %v1207_v5, %v1205_v4  ;;  %v3312_v4 = vld [vmem:[#allocation8 + $0x70] ss:$8 sps:$4 sm:$0xff]  }
 0x225   :  { %v1166_v28 = vmul.f32 %v4084_v47, %v1118_v23  ;;  %1821 = vmatpush1.bf16.msra.mxu1 %v3300_v63  ;;  %v1120_v32 = vpop.f32.mrb[14].mxu0  ;;  %v4164_v37 = vpack.c.bf16 %v1208_v15, %v1206_v10  ;;  %v3317_v10 = vld [vmem:[#allocation8 + $0x84] ss:$8 sps:$4 sm:$0xff]   ;;  %v3320_v23 = vld [vmem:[#allocation8 + $0x94] ss:$8 sps:$4 sm:$0xff]  }
 0x226   :  { %v1193_v6 = vadd.f32 %v4087_v22, %v1165_v20  ;;  %v1167_v31 = vmul.f32 %v4081_v42, %v1120_v32  ;;  %v1122_v34 = vpop.f32.mrb[15].mxu0  ;;  %1822 = vmatprep.subr.bf16.mxu1 %v3305_v7  ;;  %v1349_v26 = vshll.u32 %v4161_v24, 16  ;;  %v1327_v42 = vrot.slane %v1325_v61, 7  ;;  %v3315_v20 = vld [vmem:[#allocation8 + $0x80] ss:$8 sps:$4 sm:$0xff]  }
 0x227   :  { %v1194_v29 = vadd.f32 %v4090_v52, %v1166_v28  ;;  %v1168_v53 = vmul.f32 %v4084_v47, %v1122_v34  ;;  %1633 = vmatprep.mubr.bf16.mxu1 %v4164_v37  ;;  %v1356_v19 = vshll.u32 %v4164_v37, 16  ;;  %v1346_v46 = vshrl.u32 %v4161_v24, 16  ;;  %v3306_v47 = vld [vmem:[#allocation8 + $0x50] ss:$8 sps:$4 sm:$0xff]   ;;  %v3323_v32 = vld [vmem:[#allocation8 + $0xa4] ss:$8 sps:$4 sm:$0xff]  }
 0x228   :  { %v1195_v25 = vadd.f32 %v4087_v22, %v1167_v31  ;;  %1634 = vmatmul.mubr.bf16.gmra.mrb[8].mxu1 %v4161_v24  ;;  %v1397_v8 = vrot.slane %v1349_v26, 1  ;;  %v1353_v38 = vshrl.u32 %v4164_v37, 16  ;;  %v1209_v22 = vmax.f32 %v1193_v6, 0.0  ;;  %v3318_v28 = vld [vmem:[#allocation8 + $0x90] ss:$8 sps:$4 sm:$0xff]  }
 0x229   :  { %v1196_v12 = vadd.f32 %v4090_v52, %v1168_v53  ;;  %1823 = vmatpush1.bf16.msra.mxu1 %v3303_v45  ;;  %v1399_v21 = vrot.slane %v1356_v19, 1  ;;  %v1210_v49 = vmax.f32 %v1194_v29, 0.0  ;;  %v1330_v50 = vor.u32 %v1328_v35, %v1327_v42  ;;  %v3321_v45 = vld [vmem:[#allocation8 + $0xa0] ss:$8 sps:$4 sm:$0xff]   ;;  %v3326_v6 = vld [vmem:[#allocation8 + $0xb4] ss:$8 sps:$4 sm:$0xff]  }
 0x22a   :  { %v1211_v58 = vmax.f32 %v1195_v25, 0.0  ;;  %1824 = vmatprep.subr.bf16.mxu1 %v3308_v1  ;;  %v4186_v61 = vor.u32 %v1397_v8, %v1346_v46  ;;  %v3324_v31 = vld [vmem:[#allocation8 + $0xb0] ss:$8 sps:$4 sm:$0xff]   ;;  %v3329_v34 = vld [vmem:[#allocation8 + $0xc4] ss:$8 sps:$4 sm:$0xff]   ;;  %v1355_v13 = vrot.slane %v1353_v38, 7 }
 0x22b   :  { %v1212_v44 = vmax.f32 %v1196_v12, 0.0  ;;  %v4190_v52 = vor.u32 %v1399_v21, %v1353_v38  ;;  %v1382_v3 = vsel %vm3876_vm2, 0, %v1330_v50  ;;  %v3327_v1 = vld [vmem:[#allocation8 + $0xc0] ss:$8 sps:$4 sm:$0xff]   ;;  %v3332_v29 = vld [vmem:[#allocation8 + $0xd4] ss:$8 sps:$4 sm:$0xff]  }
 0x22c   :  { %v4192_v54 = vpack.c.bf16 %v1211_v58, %v1209_v22  ;;  %v3330_v53 = vld [vmem:[#allocation8 + $0xd0] ss:$8 sps:$4 sm:$0xff]   ;;  %v3335_v25 = vld [vmem:[#allocation8 + $0xe4] ss:$8 sps:$4 sm:$0xff]   ;;  %v3333_v42 = vld [vmem:[#allocation8 + $0xe0] ss:$8 sps:$4 sm:$0xff]  }
 0x22d   :  { %1825 = vmatpush1.bf16.msra.mxu1 %v3306_v47  ;;  %v4196_v51 = vpack.c.bf16 %v1212_v44, %v1210_v49  ;;  %v3338_v8 = vld [vmem:[#allocation8 + $0xf4] ss:$8 sps:$4 sm:$0xff]   ;;  %v1320_v12 = vrot.slane %v1318_v2, 7  ;;  %v1341_v47 = vrot.slane %v1339_v0, 7  ;;  %v3336_v21 = vld [vmem:[#allocation8 + $0xf0] ss:$8 sps:$4 sm:$0xff]  }
 0x22e   :  { %1826 = vmatprep.subr.bf16.mxu1 %v3311_v33  ;;  %v1363_v41 = vshll.u32 %v4192_v54, 16  ;;  %v1360_v17 = vshrl.u32 %v4192_v54, 16  ;;  %v3341_v22 = vld [vmem:[#allocation11 + $0x4] ss:$8 sps:$4 sm:$0xff]   ;;  %v3339_v49 = vld [vmem:[#allocation11] ss:$8 sps:$4 sm:$0xff]  }
 0x22f   :  { %1643 = vmatprep.mubr.bf16.mxu1 %v4196_v51  ;;  %v1370_v63 = vshll.u32 %v4196_v51, 16  ;;  %v1367_v5 = vshrl.u32 %v4196_v51, 16  ;;  %v1323_v58 = vor.u32 %v1321_v27, %v1320_v12  ;;  %v1344_v33 = vor.u32 %v1342_v59, %v1341_v47  ;;  %v3344_v44 = vld [vmem:[#allocation11 + $0x14] ss:$8 sps:$4 sm:$0xff]   ;;  %v3342_v27 = vld [vmem:[#allocation11 + $0x10] ss:$8 sps:$4 sm:$0xff]  }
 0x230   :  { %1644 = vmatmul.mubr.bf16.gmra.mrb[12].mxu1 %v4192_v54  ;;  %v1401_v35 = vrot.slane %v1363_v41, 1  ;;  %v1334_v0 = vrot.slane %v1332_v62, 7  ;;  %v3345_v62 = vld [vmem:[#allocation11 + $0x20] ss:$8 sps:$4 sm:$0xff]   ;;  %v1348_v38 = vrot.slane %v1346_v46, 7 }
 0x231   :  { %1827 = vmatpush1.bf16.msra.mxu1 %v3309_v60  ;;  %1846 = vmatprep.mubr.bf16.mxu1 %v1382_v3  ;;  %v1403_v7 = vrot.slane %v1370_v63, 1  ;;  %v1381_v2 = vsel %vm3876_vm2, 0, %v1323_v58  ;;  %v1384_v50 = vsel %vm3876_vm2, 0, %v1344_v33  ;;  %v1358_v60 = vor.u32 %v1356_v19, %v1355_v13  ;;  %v3353_v37 = vld [vmem:[#allocation11 + $0x44] ss:$8 sps:$4 sm:$0xff]   ;;  %v2251_v13 = vld [vmem:[%s4550_s13 + $0x18] sm:$0xff] }
 0x232   :  { %1828 = vmatprep.subr.bf16.mxu1 %v3314_v30  ;;  %v4212_v15 = vor.u32 %v1401_v35, %v1360_v17  ;;  %v1337_v59 = vor.u32 %v1335_v56, %v1334_v0  ;;  %v3350_v30 = vld [vmem:[#allocation11 + $0x34] ss:$8 sps:$4 sm:$0xff]   ;;  %v1369_v36 = vrot.slane %v1367_v5, 7  ;;  %v3348_v56 = vld [vmem:[#allocation11 + $0x30] ss:$8 sps:$4 sm:$0xff]   ;;  %v1351_v19 = vor.u32 %v1349_v26, %v1348_v38 }
 0x233   :  { %v4216_v16 = vor.u32 %v1403_v7, %v1367_v5  ;;  %v1386_v35 = vsel %vm3876_vm2, 0, %v1358_v60  ;;  %v3351_v46 = vld [vmem:[#allocation11 + $0x40] ss:$8 sps:$4 sm:$0xff]   ;;  %v3356_v7 = vld [vmem:[#allocation11 + $0x54] ss:$8 sps:$4 sm:$0xff]   ;;  %v1362_v5 = vrot.slane %v1360_v17, 7 }
 0x234   :  { %v1383_v3 = vsel %vm3876_vm2, 0, %v1337_v59  ;;  %v3354_v24 = vld [vmem:[#allocation11 + $0x50] ss:$8 sps:$4 sm:$0xff]   ;;  %v3359_v26 = vld [vmem:[#allocation11 + $0x64] ss:$8 sps:$4 sm:$0xff]   ;;  %v1414_v17 = vsel %vm4024_vm5, %v4128_v48, 0 }
 0x235   :  { %1829 = vmatpush1.bf16.msra.mxu1 %v3312_v4  ;;  %v1372_v4 = vor.u32 %v1370_v63, %v1369_v36  ;;  %v1365_v51 = vor.u32 %v1363_v41, %v1362_v5  ;;  %v3357_v63 = vld [vmem:[#allocation11 + $0x60] ss:$8 sps:$4 sm:$0xff]   ;;  %v3368_v41 = vld [vmem:[#allocation11 + $0x94] ss:$8 sps:$4 sm:$0xff]   ;;  %v3377_v48 = vld [vmem:[#allocation11 + $0xc4] ss:$8 sps:$4 sm:$0xff]  }
 0x236   :  { %1830 = vmatprep.subr.bf16.mxu1 %v3317_v10  ;;  %v1385_v10 = vsel %vm3876_vm2, 0, %v1351_v19  ;;  %v3363_v54 = vld [vmem:[#allocation11 + $0x80] ss:$8 sps:$4 sm:$0xff]   ;;  %v3386_v12 = vld [vmem:[#allocation11 + $0xf4] ss:$8 sps:$4 sm:$0xff]   ;;  %v1415_v58 = vsel %vm4024_vm5, %v4154_v9, 0 }
 0x237   :  { %v3384_v47 = vld [vmem:[#allocation11 + $0xf0] ss:$8 sps:$4 sm:$0xff]   ;;  %v1418_v33 = vsel %vm4024_vm5, %v4190_v52, 0  ;;  %v1419_v9 = vsel %vm4024_vm5, %v4212_v15, 0  ;;  %v2264_v52 = vld [vmem:[%s4550_s13 + $0x80] sm:$0xff]  ;;  %v2269_v59 = vld [vmem:[%s4550_s13 + $0xa8] sm:$0xff] }
 0x238   :  { %v2266_v15 = vld [vmem:[%s4550_s13 + $0x90] sm:$0xff]  ;;  %v2257_v5 = vld [vmem:[%s4550_s13 + $0x48] sm:$0xff] }
 0x239   :  { %1831 = vmatpush1.bf16.msra.mxu1 %v3315_v20  ;;  %v1388_v20 = vsel %vm3876_vm2, 0, %v1372_v4  ;;  %v2270_v38 = vld [vmem:[%s4550_s13 + $0xb0] sm:$0xff]  ;;  %v2272_v4 = vld [vmem:[%s4550_s13 + $0xc0] sm:$0xff] }
 0x23a   :  { %1832 = vmatprep.subr.bf16.mxu1 %v3320_v23  ;;  %v3362_v23 = vld [vmem:[#allocation11 + $0x74] ss:$8 sps:$4 sm:$0xff]  }
 0x23d   :  { %1833 = vmatpush1.bf16.msra.mxu1 %v3318_v28  ;;  %v1387_v28 = vsel %vm3876_vm2, 0, %v1365_v51 }
 0x23e   :  { %1834 = vmatprep.subr.bf16.mxu1 %v3323_v32  ;;  %v3360_v32 = vld [vmem:[#allocation11 + $0x70] ss:$8 sps:$4 sm:$0xff]  }
 0x241   :  { %1835 = vmatpush1.bf16.msra.mxu1 %v3321_v45  ;;  %v3365_v45 = vld [vmem:[#allocation11 + $0x84] ss:$8 sps:$4 sm:$0xff]  }
 0x242   :  { %1836 = vmatprep.subr.bf16.mxu1 %v3326_v6  ;;  %v3366_v6 = vld [vmem:[#allocation11 + $0x90] ss:$8 sps:$4 sm:$0xff]  }
 0x245   :  { %1837 = vmatpush1.bf16.msra.mxu1 %v3324_v31  ;;  %v3371_v31 = vld [vmem:[#allocation11 + $0xa4] ss:$8 sps:$4 sm:$0xff]  }
 0x246   :  { %1838 = vmatprep.subr.bf16.mxu1 %v3329_v34  ;;  %v3374_v34 = vld [vmem:[#allocation11 + $0xb4] ss:$8 sps:$4 sm:$0xff]  }
 0x249   :  { %1839 = vmatpush1.bf16.msra.mxu1 %v3327_v1  ;;  %v3372_v1 = vld [vmem:[#allocation11 + $0xb0] ss:$8 sps:$4 sm:$0xff]  }
 0x24a   :  { %1840 = vmatprep.subr.bf16.mxu1 %v3332_v29  ;;  %v3375_v29 = vld [vmem:[#allocation11 + $0xc0] ss:$8 sps:$4 sm:$0xff]  }
 0x24d   :  { %1841 = vmatpush1.bf16.msra.mxu1 %v3330_v53  ;;  %v3380_v53 = vld [vmem:[#allocation11 + $0xd4] ss:$8 sps:$4 sm:$0xff]  }
 0x24e   :  { %1842 = vmatprep.subr.bf16.mxu1 %v3335_v25  ;;  %v3378_v25 = vld [vmem:[#allocation11 + $0xd0] ss:$8 sps:$4 sm:$0xff]  }
 0x251   :  { %1843 = vmatpush1.bf16.msra.mxu1 %v3333_v42  ;;  %v3383_v42 = vld [vmem:[#allocation11 + $0xe4] ss:$8 sps:$4 sm:$0xff]  }
 0x252   :  { %1844 = vmatprep.subr.bf16.mxu1 %v3338_v8  ;;  %v3381_v8 = vld [vmem:[#allocation11 + $0xe0] ss:$8 sps:$4 sm:$0xff]  }
 0x255   :  { %1845 = vmatpush1.bf16.msra.mxu1 %v3336_v21  ;;  %v1413_v21 = vsel %vm4024_vm5, %v4124_v55, 0  ;;  %v1417_v55 = vsel %vm4024_vm5, %v4186_v61, 0 }
 0x256   :  { %2047 = vmatprep.subr.bf16.mxu1 %v3341_v22  ;;  %v1416_v22 = vsel %vm4024_vm5, %v4158_v18, 0  ;;  %v1420_v18 = vsel %vm4024_vm5, %v4216_v16, 0  ;;  %v2249_v16 = vld [vmem:[%s4550_s13 + $0x8] sm:$0xff] }
 0x258   :  { %1847 = vmatmul.mubr.bf16.vlgmr.msra.gmra.mrb[0].mxu1 %v1381_v2  ;;  %v2267_v2 = vld [vmem:[%s4550_s13 + $0x98] sm:$0xff] }
 0x259   :  { %1856 = vmatprep.mubr.bf16.mxu1 %v1384_v50  ;;  %2048 = vmatpush1.bf16.msra.mxu1 %v3339_v49  ;;  %v2265_v49 = vld [vmem:[%s4550_s13 + $0x88] sm:$0xff]  ;;  %v2990_v0 = vpack.c.bf16 %v2267_v2, %v2266_v15  ;;  %v2250_v50 = vld [vmem:[%s4550_s13 + $0x10] sm:$0xff] }
 0x25a   :  { %2049 = vmatprep.subr.bf16.mxu1 %v3344_v44  ;;  %v2986_v61 = vpack.c.bf16 %v2265_v49, %v2264_v52  ;;  %v2248_v44 = vld [vmem:[%s4550_s13] sm:$0xff] }
 0x25b   :  { %v2988_v57 = vpack.c.bf16 %v2249_v16, %v2248_v44 }
 0x25c   :  { %2987 = vmatprep.subr.bf16.mxu0 %v2986_v61 }
 0x25d   :  { %2050 = vmatpush1.bf16.msra.mxu1 %v3342_v27  ;;  %2989 = vmatpush3.bf16.msra.mxu0 %v2988_v57  ;;  %v2992_v27 = vpack.c.bf16 %v2251_v13, %v2250_v50 }
 0x25e   :  { %2051 = vmatprep.subr.bf16.mxu1 %v3347_v40  ;;  %2991 = vmatprep.subr.bf16.mxu0 %v2990_v0  ;;  %v2268_v40 = vld [vmem:[%s4550_s13 + $0xa0] sm:$0xff] }
 0x25f   :  { %v2994_v60 = vpack.c.bf16 %v2269_v59, %v2268_v40 }
 0x260   :  { %1857 = vmatmul.mubr.bf16.gmra.mrb[4].mxu1 %v1383_v3 }
 0x261   :  { %1866 = vmatprep.mubr.bf16.mxu1 %v1386_v35  ;;  %2052 = vmatpush1.bf16.msra.mxu1 %v3345_v62  ;;  %v2252_v62 = vld [vmem:[%s4550_s13 + $0x20] sm:$0xff]  ;;  %v2271_v35 = vld [vmem:[%s4550_s13 + $0xb8] sm:$0xff] }
 0x262   :  { %2053 = vmatprep.subr.bf16.mxu1 %v3350_v30  ;;  %2993 = vmatpush3.bf16.msra.mxu0 %v2992_v27  ;;  %v2253_v30 = vld [vmem:[%s4550_s13 + $0x28] sm:$0xff]  ;;  %v2998_v36 = vpack.c.bf16 %v2271_v35, %v2270_v38 }
 0x263   :  { %v2996_v3 = vpack.c.bf16 %v2253_v30, %v2252_v62  ;;  %2995 = vmatprep.subr.bf16.mxu0 %v2994_v60 }
 0x265   :  { %2054 = vmatpush1.bf16.msra.mxu1 %v3348_v56  ;;  %v2254_v56 = vld [vmem:[%s4550_s13 + $0x30] sm:$0xff] }
 0x266   :  { %2055 = vmatprep.subr.bf16.mxu1 %v3353_v37  ;;  %2997 = vmatpush3.bf16.msra.mxu0 %v2996_v3  ;;  %v2255_v37 = vld [vmem:[%s4550_s13 + $0x38] sm:$0xff] }
 0x267   :  { %v3000_v19 = vpack.c.bf16 %v2255_v37, %v2254_v56  ;;  %2999 = vmatprep.subr.bf16.mxu0 %v2998_v36 }
 0x268   :  { %1867 = vmatmul.mubr.bf16.gmra.mrb[8].mxu1 %v1385_v10  ;;  %v2256_v10 = vld [vmem:[%s4550_s13 + $0x40] sm:$0xff] }
 0x269   :  { %1876 = vmatprep.mubr.bf16.mxu1 %v1388_v20  ;;  %2056 = vmatpush1.bf16.msra.mxu1 %v3351_v46  ;;  %v2273_v46 = vld [vmem:[%s4550_s13 + $0xc8] sm:$0xff]  ;;  %v3004_v20 = vpack.c.bf16 %v2257_v5, %v2256_v10 }
 0x26a   :  { %2057 = vmatprep.subr.bf16.mxu1 %v3356_v7  ;;  %3001 = vmatpush3.bf16.msra.mxu0 %v3000_v19  ;;  %v3002_v7 = vpack.c.bf16 %v2273_v46, %v2272_v4 }
 0x26c   :  { %3003 = vmatprep.subr.bf16.mxu0 %v3002_v7 }
 0x26d   :  { %2058 = vmatpush1.bf16.msra.mxu1 %v3354_v24  ;;  %v2274_v24 = vld [vmem:[%s4550_s13 + $0xd0] sm:$0xff] }
 0x26e   :  { %2059 = vmatprep.subr.bf16.mxu1 %v3359_v26  ;;  %3005 = vmatpush3.bf16.msra.mxu0 %v3004_v20  ;;  %v2275_v26 = vld [vmem:[%s4550_s13 + $0xd8] sm:$0xff] }
 0x26f   :  { %v3006_v51 = vpack.c.bf16 %v2275_v26, %v2274_v24 }
 0x270   :  { %1877 = vmatmul.mubr.bf16.gmra.mrb[12].mxu1 %v1387_v28 }
 0x271   :  { %2060 = vmatpush1.bf16.msra.mxu1 %v3357_v63  ;;  %2079 = vmatprep.mubr.bf16.mxu1 %v1414_v17  ;;  %v2258_v63 = vld [vmem:[%s4550_s13 + $0x50] sm:$0xff]  ;;  %v2276_v17 = vld [vmem:[%s4550_s13 + $0xe0] sm:$0xff] }
 0x272   :  { %2061 = vmatprep.subr.bf16.mxu1 %v3362_v23  ;;  %v2259_v23 = vld [vmem:[%s4550_s13 + $0x58] sm:$0xff]  ;;  %3007 = vmatprep.subr.bf16.mxu0 %v3006_v51 }
 0x273   :  { %v3008_v28 = vpack.c.bf16 %v2259_v23, %v2258_v63 }
 0x275   :  { %2062 = vmatpush1.bf16.msra.mxu1 %v3360_v32  ;;  %3009 = vmatpush3.bf16.msra.mxu0 %v3008_v28  ;;  %v2277_v32 = vld [vmem:[%s4550_s13 + $0xe8] sm:$0xff] }
 0x276   :  { %2063 = vmatprep.subr.bf16.mxu1 %v3365_v45  ;;  %v3010_v45 = vpack.c.bf16 %v2277_v32, %v2276_v17 }
 0x278   :  { %3011 = vmatprep.subr.bf16.mxu0 %v3010_v45 }
 0x279   :  { %2064 = vmatpush1.bf16.msra.mxu1 %v3363_v54  ;;  %v2260_v54 = vld [vmem:[%s4550_s13 + $0x60] sm:$0xff] }
 0x27a   :  { %2065 = vmatprep.subr.bf16.mxu1 %v3368_v41  ;;  %v2261_v41 = vld [vmem:[%s4550_s13 + $0x68] sm:$0xff] }
 0x27d   :  { %2066 = vmatpush1.bf16.msra.mxu1 %v3366_v6  ;;  %v3012_v6 = vpack.c.bf16 %v2261_v41, %v2260_v54 }
 0x27e   :  { %2067 = vmatprep.subr.bf16.mxu1 %v3371_v31  ;;  %v2278_v31 = vld [vmem:[%s4550_s13 + $0xf0] sm:$0xff] }
 0x27f   :  { %3013 = vmatpush3.bf16.msra.mxu0 %v3012_v6 }
 0x281   :  { %2068 = vmatpush1.bf16.msra.mxu1 %v3369_v43  ;;  %v2279_v43 = vld [vmem:[%s4550_s13 + $0xf8] sm:$0xff] }
 0x282   :  { %2069 = vmatprep.subr.bf16.mxu1 %v3374_v34  ;;  %v2262_v34 = vld [vmem:[%s4550_s13 + $0x70] sm:$0xff] }
 0x285   :  { %2070 = vmatpush1.bf16.msra.mxu1 %v3372_v1  ;;  %v3014_v1 = vpack.c.bf16 %v2279_v43, %v2278_v31 }
 0x286   :  { %2071 = vmatprep.subr.bf16.mxu1 %v3377_v48  ;;  %v2263_v48 = vld [vmem:[%s4550_s13 + $0x78] sm:$0xff] }
 0x287   :  { %3015 = vmatprep.subr.bf16.mxu0 %v3014_v1 }
 0x289   :  { %2072 = vmatpush1.bf16.msra.mxu1 %v3375_v29  ;;  %v3016_v29 = vpack.c.bf16 %v2263_v48, %v2262_v34 }
 0x28a   :  { %2073 = vmatprep.subr.bf16.mxu1 %v3380_v53 }
 0x28b   :  { %3017 = vmatpush3.bf16.msra.mxu0 %v3016_v29 }
 0x28d   :  { %2074 = vmatpush1.bf16.msra.mxu1 %v3378_v25 }
 0x28e   :  { %2075 = vmatprep.subr.bf16.mxu1 %v3383_v42 }
 0x291   :  { %2076 = vmatpush1.bf16.msra.mxu1 %v3381_v8 }
 0x292   :  { %2077 = vmatprep.subr.bf16.mxu1 %v3386_v12  ;;  %v2136_v12 = vld [vmem:[%s4548_s11] sm:$0x3] }
 0x295   :  { %2078 = vmatpush1.bf16.msra.mxu1 %v3384_v47  ;;  %v2164_v47 = vld [vmem:[%s4549_s12] sm:$0x3] }
 0x298   :  { %2080 = vmatmul.mubr.bf16.vlgmr.msra.gmra.mrb[0].mxu1 %v1413_v21  ;;  %v2145_v21 = vrot.slane %v2136_v12, %v3779_v14 }
 0x299   :  { %2089 = vmatprep.mubr.bf16.mxu1 %v1416_v22 }
 0x2a0   :  { %2090 = vmatmul.mubr.bf16.gmra.mrb[4].mxu1 %v1415_v58  ;;  %v2141_v58 = vrot.slane %v2136_v12, %v3801_v39 }
 0x2a1   :  { %2099 = vmatprep.mubr.bf16.mxu1 %v1418_v33 }
 0x2a8   :  { %2100 = vmatmul.mubr.bf16.gmra.mrb[8].mxu1 %v1417_v55 }
 0x2a9   :  { %2109 = vmatprep.mubr.bf16.mxu1 %v1420_v18  ;;  %v2169_v18 = vrot.slane %v2164_v47, %v3801_v39 }
 0x2b0   :  { %2110 = vmatmul.mubr.bf16.gmra.mrb[12].mxu1 %v1419_v9  ;;  %v4390_v9 = vrot.slane %v2164_v47, %v3779_v14 }
 0x36b   :  { %v2081_v53 = vpop.f32.mrb[0].mxu1 }
 0x36c   :  { %v2083_v25 = vpop.f32.mrb[1].mxu1  ;;  %v2148_v0 = vmul.f32 %v2141_v58, %v2081_v53 }
 0x36d   :  { %v2085_v42 = vpop.f32.mrb[2].mxu1  ;;  %v2149_v61 = vmul.f32 %v2145_v21, %v2083_v25 }
 0x36e   :  { %v2087_v8 = vpop.f32.mrb[3].mxu1  ;;  %v2150_v44 = vmul.f32 %v2141_v58, %v2085_v42  ;;  %v4412_v38 = vadd.f32 %v2169_v18, %v2148_v0 }
 0x36f   :  { %v2151_v33 = vmul.f32 %v2145_v21, %v2087_v8  ;;  %v4404_v59 = vadd.f32 %v4390_v9, %v2149_v61 }
 0x370   :  { %v4406_v60 = vadd.f32 %v2169_v18, %v2150_v44 }
 0x371   :  { %v4393_v50 = vadd.f32 %v4390_v9, %v2151_v33 }
 0x372   :  { %v2192_v46 = vadd.f32 %v4406_v60, %v4412_v38 }
 0x373   :  { %v2091_v22 = vpop.f32.mrb[4].mxu1  ;;  %v2199_v35 = vadd.f32 %v4393_v50, %v4404_v59 }
 0x374   :  { %v2093_v55 = vpop.f32.mrb[5].mxu1  ;;  %v2152_v16 = vmul.f32 %v2141_v58, %v2091_v22  ;;  %v2193_v17 = vrot.slane %v2192_v46, 4 }
 0x375   :  { %v2153_v52 = vmul.f32 %v2145_v21, %v2093_v55  ;;  %v2095_v49 = vpop.f32.mrb[6].mxu1  ;;  %v2200_v24 = vrot.slane %v2199_v35, 4 }
 0x376   :  { %v2154_v57 = vmul.f32 %v2141_v58, %v2095_v49  ;;  %v2097_v15 = vpop.f32.mrb[7].mxu1  ;;  %v4408_v62 = vadd.f32 %v2169_v18, %v2152_v16  ;;  %v2194_v25 = vadd.f32 %v2193_v17, %v2192_v46 }
 0x377   :  { %v2155_v2 = vmul.f32 %v2145_v21, %v2097_v15  ;;  %v4398_v27 = vadd.f32 %v4390_v9, %v2153_v52  ;;  %v2201_v6 = vadd.f32 %v2200_v24, %v2199_v35 }
 0x378   :  { %v4395_v13 = vadd.f32 %v2169_v18, %v2154_v57 }
 0x379   :  { %v4401_v40 = vadd.f32 %v4390_v9, %v2155_v2  ;;  %v2202_v55 = vrot.slane %v2201_v6, 2  ;;  %v2195_v2 = vrot.slane %v2194_v25, 2 }
 0x37a   :  { %v2206_v36 = vadd.f32 %v4395_v13, %v4408_v62 }
 0x37b   :  { %v2213_v30 = vadd.f32 %v4401_v40, %v4398_v27  ;;  %v2101_v3 = vpop.f32.mrb[8].mxu1  ;;  %v2203_v35 = vadd.f32 %v2202_v55, %v2201_v6 }
 0x37c   :  { %v2156_v56 = vmul.f32 %v2141_v58, %v2101_v3  ;;  %v2103_v37 = vpop.f32.mrb[9].mxu1  ;;  %v2207_v26 = vrot.slane %v2206_v36, 4 }
 0x37d   :  { %v2157_v19 = vmul.f32 %v2145_v21, %v2103_v37  ;;  %v2105_v4 = vpop.f32.mrb[10].mxu1  ;;  %v2214_v5 = vrot.slane %v2213_v30, 4  ;;  %v2196_v37 = vadd.f32 %v2195_v2, %v2194_v25 }
 0x37e   :  { %v2158_v7 = vmul.f32 %v2141_v58, %v2105_v4  ;;  %v2107_v10 = vpop.f32.mrb[11].mxu1  ;;  %v4420_v51 = vadd.f32 %v2169_v18, %v2156_v56  ;;  %v2208_v31 = vadd.f32 %v2207_v26, %v2206_v36 }
 0x37f   :  { %v2159_v20 = vmul.f32 %v2145_v21, %v2107_v10  ;;  %v4425_v23 = vadd.f32 %v4390_v9, %v2157_v19  ;;  %v2215_v45 = vadd.f32 %v2214_v5, %v2213_v30  ;;  %v2204_v5 = vrot.slane %v2203_v35, 1 }
 0x380   :  { %v4422_v63 = vadd.f32 %v2169_v18, %v2158_v7  ;;  %v2209_v52 = vrot.slane %v2208_v31, 2  ;;  %v2197_v26 = vrot.slane %v2196_v37, 1 }
 0x381   :  { %v4428_v28 = vadd.f32 %v4390_v9, %v2159_v20  ;;  %v2216_v47 = vrot.slane %v2215_v45, 2  ;;  %v2205_v6 = vadd.f32 %v2204_v5, %v2203_v35 }
 0x382   :  { %v2220_v32 = vadd.f32 %v4422_v63, %v4420_v51  ;;  %v2210_v30 = vadd.f32 %v2209_v52, %v2208_v31 }
 0x383   :  { %v2227_v54 = vadd.f32 %v4428_v28, %v4425_v23  ;;  %v2111_v41 = vpop.f32.mrb[12].mxu1  ;;  %v2217_v0 = vadd.f32 %v2216_v47, %v2215_v45 }
 0x384   :  { %v2221_v43 = vrot.slane %v2220_v32, 4  ;;  %v2160_v34 = vmul.f32 %v2141_v58, %v2111_v41  ;;  %v2113_v1 = vpop.f32.mrb[13].mxu1 }
 0x385   :  { %v2228_v48 = vrot.slane %v2227_v54, 4  ;;  %v2161_v29 = vmul.f32 %v2145_v21, %v2113_v1  ;;  %v2115_v53 = vpop.f32.mrb[14].mxu1  ;;  %v2218_v4 = vrot.slane %v2217_v0, 1  ;;  %v2198_v1 = vadd.f32 %v2197_v26, %v2196_v37 }
 0x386   :  { %v2222_v42 = vadd.f32 %v2221_v43, %v2220_v32  ;;  %v2162_v8 = vmul.f32 %v2141_v58, %v2115_v53  ;;  %v2117_v12 = vpop.f32.mrb[15].mxu1  ;;  %v4434_v49 = vadd.f32 %v2169_v18, %v2160_v34 }
 0x387   :  { %v2229_v22 = vadd.f32 %v2228_v48, %v2227_v54  ;;  %v2163_v33 = vmul.f32 %v2145_v21, %v2117_v12  ;;  %v4439_v57 = vadd.f32 %v4390_v9, %v2161_v29  ;;  %v2219_v32 = vadd.f32 %v2218_v4, %v2217_v0 }
 0x388   :  { %v4436_v61 = vadd.f32 %v2169_v18, %v2162_v8  ;;  %v2223_v44 = vrot.slane %v2222_v42, 2 }
 0x389   :  { %v2230_v16 = vrot.slane %v2229_v22, 2  ;;  %v4442_v15 = vadd.f32 %v4390_v9, %v2163_v33  ;;  %v2211_v9 = vrot.slane %v2210_v30, 1  ;;  %v2294_v53 = vsel %vm2288_vm6, %v2219_v32, %v2205_v6 }
 0x38a   :  { %v2234_v58 = vadd.f32 %v4436_v61, %v4434_v49  ;;  %v2224_v36 = vadd.f32 %v2223_v44, %v2222_v42 }
 0x38b   :  { %v2241_v21 = vadd.f32 %v4442_v15, %v4439_v57  ;;  %v2231_v3 = vadd.f32 %v2230_v16, %v2229_v22  ;;  %v2212_v54 = vadd.f32 %v2211_v9, %v2210_v30  ;;  %v2393_v16 = vsub.s32 2, %v3776_v11 }
 0x38c   :  { %v2235_v18 = vrot.slane %v2234_v58, 4  ;;  %v2225_v20 = vrot.slane %v2224_v36, 1 }
 0x38d   :  { %v2242_v56 = vrot.slane %v2241_v21, 4  ;;  %v2232_v10 = vrot.slane %v2231_v3, 1  ;;  %v2289_v42 = vsel %vm2288_vm6, %v2212_v54, %v2198_v1 }
 0x38e   :  { %v2236_v19 = vadd.f32 %v2235_v18, %v2234_v58  ;;  %v2226_v43 = vadd.f32 %v2225_v20, %v2224_v36  ;;  %v2404_v58 = vsub.s32 3, %v3776_v11  ;;  %v2414_v18 = vld [vmem:[%s4552_s15 + $0x8] sm:$0xff] }
 0x38f   :  { %v2243_v46 = vadd.f32 %v2242_v56, %v2241_v21  ;;  %v2233_v31 = vadd.f32 %v2232_v10, %v2231_v3  ;;  %v2413_v21 = vld [vmem:[%s4552_s15] sm:$0xff] }
 0x390   :  { %v2237_v7 = vrot.slane %v2236_v19, 2  ;;  %v2291_v12 = vsel %vm2290_vm7, %v2226_v43, %v2289_v42 }
 0x391   :  { %v2244_v24 = vrot.slane %v2243_v46, 2  ;;  %v2295_v25 = vsel %vm2290_vm7, %v2233_v31, %v2294_v53 }
 0x392   :  { %v2238_v17 = vadd.f32 %v2237_v7, %v2236_v19 }
 0x393   :  { %v2245_v45 = vadd.f32 %v2244_v24, %v2243_v46 }
 0x394   :  { %v2239_v41 = vrot.slane %v2238_v17, 1 }
 0x395   :  { %v2246_v34 = vrot.slane %v2245_v45, 1 }
 0x396   :  { %v2240_v48 = vadd.f32 %v2239_v41, %v2238_v17 }
 0x397   :  { %v2247_v29 = vadd.f32 %v2246_v34, %v2245_v45 }
 0x398   :  { %v2293_v47 = vsel %vm2292_vm8, %v2240_v48, %v2291_v12 }
 0x399   :  { %v2296_v8 = vsel %vm2292_vm8, %v2247_v29, %v2295_v25 }
 0x39a   :  { %2363 = vmatprep.mubr.f32.mxu0 %v2296_v8 }
 0x39b   :  { %2364 = vmatmul.mubr.f32.vlgmr.msra.gmra.mrb[16].mxu0 %v2293_v47 }
 0x46e   :  { %v2983_v22 = vpop.f32.mrb[16].mxu0 }
 0x46f   :  { %v2984_v33 = vpop.f32.mrb[17].mxu0 }
 0x470   :  { %v2985_v55 = vadd.f32 %v2984_v33, %v2983_v22 }
 0x472   :  { %v2383_v52 = vrot.slane %v2985_v55, %v3779_v14  ;;  %v2372_v44 = vrot.slane %v2985_v55, %v3801_v39  ;;  %v2394_v2 = vrot.slane %v2985_v55, %v2393_v16  ;;  %v2405_v0 = vrot.slane %v2985_v55, %v2404_v58 }
 0x474   :  { %2385 = vbcast.lane.b32.xlu1 %v2383_v52, 256  ;;  %2374 = vbcast.lane.b32.xlu0 %v2372_v44, 256 }
 0x478   :  { %2389 = vbcast.lane.b32.xlu1 %v2383_v52, 264  ;;  %2378 = vbcast.lane.b32.xlu0 %v2372_v44, 264 }
 0x47c   :  { %2400 = vbcast.lane.b32.xlu1 %v2394_v2, 264  ;;  %2396 = vbcast.lane.b32.xlu0 %v2394_v2, 256 }
 0x480   :  { %2411 = vbcast.lane.b32.xlu1 %v2405_v0, 264  ;;  %2407 = vbcast.lane.b32.xlu0 %v2405_v0, 256 }
 0x4e6   :  { %v2386_v30 = vpop.permute.xlu1 %2385  ;;  %v2375_v3 = vpop.permute.xlu0 %2374 }
 0x4e7   :  { %v2417_v35 = vmul.f32 %v2413_v21, %v2386_v30  ;;  %v2415_v36 = vmul.f32 %v2413_v21, %v2375_v3 }
 0x4e9   :  { %v2433_v46 = vsel %vm2423_vm9, %v2417_v35, 0.0  ;;  %v2424_v9 = vsel %vm2423_vm9, %v2415_v36, 0.0 }
 0x4ea   :  { %v2390_v56 = vpop.permute.xlu1 %2389  ;;  %v2379_v37 = vpop.permute.xlu0 %2378 }
 0x4eb   :  { %v2418_v19 = vmul.f32 %v2414_v18, %v2390_v56  ;;  %v2416_v4 = vmul.f32 %v2414_v18, %v2379_v37 }
 0x4ed   :  { %v2434_v7 = vsel %vm2423_vm9, %v2418_v19, 0.0  ;;  %v2425_v10 = vsel %vm2423_vm9, %v2416_v4, 0.0 }
 0x4ee   :  { %v2435_v5 = vadd.f32 %v2434_v7, %v2433_v46  ;;  %v2426_v20 = vadd.f32 %v2425_v10, %v2424_v9  ;;  %v2401_v24 = vpop.permute.xlu1 %2400  ;;  %v2397_v26 = vpop.permute.xlu0 %2396  ;;  %v2535_v10 = vld [vmem:[%s4551_s14 + $0x8] sm:$0xff] }
 0x4ef   :  { %v2420_v17 = vmul.f32 %v2414_v18, %v2401_v24  ;;  %v2419_v32 = vmul.f32 %v2413_v21, %v2397_v26  ;;  %v2536_v26 = vld [vmem:[%s4551_s14 + $0x10] sm:$0xff] }
 0x4f0   :  { %v2436_v45 = vrot.slane %v2435_v5, 4  ;;  %v2427_v54 = vrot.slane %v2426_v20, 4 }
 0x4f1   :  { %v2443_v41 = vsel %vm2423_vm9, %v2420_v17, 0.0  ;;  %v2442_v31 = vsel %vm2423_vm9, %v2419_v32, 0.0  ;;  %v3593_v17 = vmov 0.0  }
 0x4f2   :  { %v2437_v6 = vadd.f32 %v2436_v45, %v2435_v5  ;;  %v2428_v43 = vadd.f32 %v2427_v54, %v2426_v20  ;;  %v2444_v34 = vadd.f32 %v2443_v41, %v2442_v31  ;;  %v2412_v1 = vpop.permute.xlu1 %2411  ;;  %v2408_v48 = vpop.permute.xlu0 %2407  ;;  %v2537_v5 = vld [vmem:[%s4551_s14 + $0x18] sm:$0xff]  ;;  %v2534_v20 = vld [vmem:[%s4551_s14] sm:$0xff]  ;;  %2612 = vmatprep.mubr.f32.mxu1 %v3593_v17  ;;  %s3595_s14 = smov [#allocation13]  }
 0x4f3   :  { %v2422_v29 = vmul.f32 %v2414_v18, %v2412_v1  ;;  %v2421_v53 = vmul.f32 %v2413_v21, %v2408_v48  ;;  %v3018_v24 = vpack.c.bf16 %v2537_v5, %v2535_v10  ;;  %v3020_v32 = vpack.c.bf16 %v2536_v26, %v2534_v20  ;;  %v2476_v45 = vld [vmem:[%s4553_s16] sm:$0xf]  ;;  %s4519_s16 = sshll.u32 %s3595_s14, 4  ;;  %s2740_s16 = int_to_ptr.vmem [resolvable:$true] %s4519_s16 }
 0x4f4   :  { %v2445_v25 = vrot.slane %v2444_v34, 4  ;;  %v2438_v42 = vrot.slane %v2437_v6, 2  ;;  %v2429_v8 = vrot.slane %v2428_v43, 2  ;;  %s3551_s17 = scalar_lea.vmem %s2740_s16, 2048  ;;  %p3556_p7 = scmp.lt.s32.totalorder %s2740_s16, %s2740_s16 }
 0x4f5   :  { %v2452_v12 = vsel %vm2423_vm9, %v2422_v29, 0.0  ;;  %v2451_v47 = vsel %vm2423_vm9, %v2421_v53, 0.0  ;;  %3019 = vmatprep.subr.bf16.mxu1 %v3018_v24  ;;  %p3552_p6 = scmp.ne.s32.totalorder %s2740_s16, %s3551_s17  ;;  %p3557_p8 = scmp.lt.s32.totalorder %s3551_s17, %s3551_s17 }
 0x4f6   :  { %v2446_v22 = vadd.f32 %v2445_v25, %v2444_v34  ;;  %v2453_v33 = vadd.f32 %v2452_v12, %v2451_v47  ;;  %v2439_v55 = vadd.f32 %v2438_v42, %v2437_v6  ;;  %v2430_v52 = vadd.f32 %v2429_v8, %v2428_v43  ;;  %3021 = vmatpush1.bf16.msra.mxu1 %v3020_v32 }
 0x4f7   :  { %p3558_p9 = por %p3557_p8, %p3556_p7 }
 0x4f8   :  { %v2454_v44 = vrot.slane %v2453_v33, 4  ;;  %v2440_v16 = vrot.slane %v2439_v55, 1  ;;  %v2431_v2 = vrot.slane %v2430_v52, 1  ;;  %v2447_v58 = vrot.slane %v2446_v22, 2 }
 0x4f9   :  { %p3559_p10 = pnand %p3558_p9, %p3552_p6 }
 0x4fa   :  { %v2455_v0 = vadd.f32 %v2454_v44, %v2453_v33  ;;  %v2441_v30 = vadd.f32 %v2440_v16, %v2439_v55  ;;  %v2432_v3 = vadd.f32 %v2431_v2, %v2430_v52  ;;  %v2448_v18 = vadd.f32 %v2447_v58, %v2446_v22 }
 0x4fc   :  { %v2461_v21 = vmax.f32 %v2441_v30, 0.0  ;;  %v2460_v35 = vmax.f32 %v2432_v3, 0.0  ;;  %v2449_v36 = vrot.slane %v2448_v18, 1  ;;  %v2456_v56 = vrot.slane %v2455_v0, 2 }
 0x4fe   :  { %2468 = vbcast.lane.b32.xlu1 %v2461_v21, 256  ;;  %2465 = vbcast.lane.b32.xlu0 %v2460_v35, 256  ;;  %v2450_v37 = vadd.f32 %v2449_v36, %v2448_v18  ;;  %v2457_v19 = vadd.f32 %v2456_v56, %v2455_v0 }
 0x500   :  { %v2462_v4 = vmax.f32 %v2450_v37, 0.0  ;;  %v2458_v46 = vrot.slane %v2457_v19, 1 }
 0x502   :  { %2471 = vbcast.lane.b32.xlu0 %v2462_v4, 256  ;;  %v2459_v9 = vadd.f32 %v2458_v46, %v2457_v19 }
 0x504   :  { %v2463_v7 = vmax.f32 %v2459_v9, 0.0 }
 0x506   :  { %2474 = vbcast.lane.b32.xlu1 %v2463_v7, 256 }
 0x570   :  { %v2469_v54 = vpop.permute.xlu1 %2468  ;;  %v2466_v41 = vpop.permute.xlu0 %2465 }
 0x571   :  { %v2478_v31 = vmul.f32 %v2476_v45, %v2469_v54  ;;  %v2477_v6 = vmul.f32 %v2476_v45, %v2466_v41 }
 0x573   :  { %v2489_v43 = vsel %vm2481_vm10, %v2478_v31, 0.0  ;;  %v2482_v34 = vsel %vm2481_vm10, %v2477_v6, 0.0 }
 0x574   :  { %v2490_v1 = vrot.slane %v2489_v43, 4  ;;  %v2483_v48 = vrot.slane %v2482_v34, 4  ;;  %v2472_v29 = vpop.permute.xlu0 %2471 }
 0x575   :  { %v2479_v53 = vmul.f32 %v2476_v45, %v2472_v29 }
 0x576   :  { %v2491_v25 = vadd.f32 %v2490_v1, %v2489_v43  ;;  %v2484_v42 = vadd.f32 %v2483_v48, %v2482_v34 }
 0x577   :  { %v2496_v8 = vsel %vm2481_vm10, %v2479_v53, 0.0 }
 0x578   :  { %v2492_v12 = vrot.slane %v2491_v25, 2  ;;  %v2485_v47 = vrot.slane %v2484_v42, 2  ;;  %v2497_v22 = vrot.slane %v2496_v8, 4  ;;  %v2475_v33 = vpop.permute.xlu1 %2474 }
 0x579   :  { %v2480_v55 = vmul.f32 %v2476_v45, %v2475_v33 }
 0x57a   :  { %v2493_v52 = vadd.f32 %v2492_v12, %v2491_v25  ;;  %v2486_v44 = vadd.f32 %v2485_v47, %v2484_v42  ;;  %v2498_v16 = vadd.f32 %v2497_v22, %v2496_v8  ;;  %v3594_v25 = vmov 1966171168  }
 0x57b   :  { %v2503_v2 = vsel %vm2481_vm10, %v2480_v55, 0.0  ;;  %v2623_v42 = vunpack.c.l.s4 %v3594_v25 }
 0x57c   :  { %v2494_v58 = vrot.slane %v2493_v52, 1  ;;  %v2487_v0 = vrot.slane %v2486_v44, 1  ;;  %v2499_v30 = vrot.slane %v2498_v16, 2  ;;  %v2504_v3 = vrot.slane %v2503_v2, 4 }
 0x57d   :  { %v2624_v8 = vunpack.c.0.s8 %v2623_v42  ;;  %v3417_v42 = vld [vmem:[#allocation2 + $0x70] sm:$0xff] }
 0x57e   :  { %v2495_v18 = vadd.f32 %v2494_v58, %v2493_v52  ;;  %v2488_v21 = vadd.f32 %v2487_v0, %v2486_v44  ;;  %v2500_v35 = vadd.f32 %v2499_v30, %v2498_v16  ;;  %v2505_v36 = vadd.f32 %v2504_v3, %v2503_v2 }
 0x57f   :  { %v2627_v47 = vsub.s32 %v2624_v8, %v3776_v11 }
 0x580   :  { %v2947_v56 = vmul.f32 -1.442695, %v2495_v18  ;;  %v2946_v37 = vmul.f32 -1.442695, %v2488_v21  ;;  %v2501_v19 = vrot.slane %v2500_v35, 1  ;;  %v2506_v4 = vrot.slane %v2505_v36, 2 }
 0x582   :  { %3387 = vpow2.f32 %v2947_v56  ;;  %v2502_v46 = vadd.f32 %v2501_v19, %v2500_v35  ;;  %v2507_v9 = vadd.f32 %v2506_v4, %v2505_v36 }
 0x583   :  { %3389 = vpow2.f32 %v2946_v37 }
 0x584   :  { %v2948_v7 = vmul.f32 -1.442695, %v2502_v46  ;;  %v2508_v10 = vrot.slane %v2507_v9, 1 }
 0x586   :  { %3391 = vpow2.f32 %v2948_v7  ;;  %v2509_v5 = vadd.f32 %v2508_v10, %v2507_v9 }
 0x588   :  { %v2949_v20 = vmul.f32 -1.442695, %v2509_v5  ;;  %v3403_v5 = vld [vmem:[#allocation2] sm:$0xff] }
 0x58a   :  { %3393 = vpow2.f32 %v2949_v20  ;;  %v3404_v20 = vld [vmem:[#allocation2 + $0x8] sm:$0xff] }
 0x58c   :  { %v3388_v24 = vpop.eup %3387 }
 0x58d   :  { %v3390_v26 = vpop.eup %3389  ;;  %v2523_v17 = vadd.f32 1.0, %v3388_v24  ;;  %v3405_v24 = vld [vmem:[#allocation2 + $0x10] sm:$0xff] }
 0x58e   :  { %v2522_v32 = vadd.f32 1.0, %v3390_v26  ;;  %v3406_v26 = vld [vmem:[#allocation2 + $0x18] sm:$0xff] }
 0x58f   :  { %3395 = vrcp.f32 %v2523_v17  ;;  %v3407_v17 = vld [vmem:[#allocation2 + $0x20] sm:$0xff] }
 0x590   :  { %v3392_v45 = vpop.eup %3391  ;;  %3397 = vrcp.f32 %v2522_v32 }
 0x591   :  { %v2524_v54 = vadd.f32 1.0, %v3392_v45 }
 0x593   :  { %3399 = vrcp.f32 %v2524_v54 }
 0x594   :  { %v3394_v41 = vpop.eup %3393 }
 0x595   :  { %v2525_v31 = vadd.f32 1.0, %v3394_v41  ;;  %v3412_v41 = vld [vmem:[#allocation2 + $0x48] sm:$0xff] }
 0x597   :  { %3401 = vrcp.f32 %v2525_v31 }
 0x599   :  { %v3396_v6 = vpop.eup %3395 }
 0x59a   :  { %v3398_v43 = vpop.eup %3397 }
 0x59b   :  { %v2542_v1 = vsel %vm2288_vm6, %v3396_v6, %v3398_v43  ;;  %v3413_v6 = vld [vmem:[#allocation2 + $0x50] sm:$0xff] }
 0x59d   :  { %v3400_v34 = vpop.eup %3399 }
 0x59e   :  { %v2543_v29 = vsel %vm2290_vm7, %v3400_v34, %v2542_v1  ;;  %v3414_v34 = vld [vmem:[#allocation2 + $0x58] sm:$0xff] }
 0x5a1   :  { %v3402_v48 = vpop.eup %3401 }
 0x5a2   :  { %v2544_v53 = vsel %vm2292_vm8, %v3402_v48, %v2543_v29  ;;  %v3415_v48 = vld [vmem:[#allocation2 + $0x60] sm:$0xff] }
 0x5a3   :  { %2950 = vmatmul.mubr.msk.f32.vlgmr.msra.gmra.mrb[16].mxu1 %vm2545_vm11, %v2544_v53  ;;  %v3416_v53 = vld [vmem:[#allocation2 + $0x68] sm:$0xff] }
 0x676   :  { %v2614_v12 = vpop.f32.mrb[16].mxu1 }
 0x677   :  { %v2616_v22 = vpop.f32.mrb[17].mxu1 }
 0x678   :  { %v2621_v33 = vcombine.low %v2614_v12, %v2616_v22  ;;  %v3418_v12 = vld [vmem:[#allocation2 + $0x78] sm:$0xff] }
 0x67a   :  { %v2628_v55 = vrot.slane %v2621_v33, %v2627_v47 }
 0x67c   :  { %v2629_v52 = vcombine.high %v2628_v55, %v2628_v55  ;;  %v2636_v44 = vrot.slane %v2628_v55, %v2627_v47 }
 0x67e   :  { %v2643_v16 = vrot.slane %v2629_v52, %v2627_v47  ;;  %v2644_v2 = vcombine.high %v2636_v44, %v2636_v44  ;;  %v2649_v58 = vrot.slane %v2636_v44, %v3801_v39  ;;  %v2653_v0 = vrot.slane %v2636_v44, %v3779_v14 }
 0x680   :  { %v2645_v30 = vcombine.high %v2643_v16, %v2643_v16  ;;  %v2657_v3 = vrot.slane %v2643_v16, %v3801_v39  ;;  %v2661_v18 = vrot.slane %v2643_v16, %v3779_v14  ;;  %v2665_v21 = vrot.slane %v2644_v2, %v3801_v39 }
 0x681   :  { %v2669_v11 = vrot.slane %v2644_v2, %v3779_v14  ;;  %v2686_v35 = vmul.f32 %v2649_v58, %v4412_v38  ;;  %v2687_v36 = vmul.f32 %v2653_v0, %v4404_v59  ;;  %v2688_v56 = vmul.f32 %v2649_v58, %v4406_v60 }
 0x682   :  { %v2673_v37 = vrot.slane %v2645_v30, %v3801_v39  ;;  %v2677_v19 = vrot.slane %v2645_v30, %v3779_v14  ;;  %v2689_v4 = vmul.f32 %v2653_v0, %v4393_v50  ;;  %v2690_v46 = vmul.f32 %v2657_v3, %v4408_v62 }
 0x683   :  { %v2691_v9 = vmul.f32 %v2661_v18, %v4398_v27  ;;  %v2692_v7 = vmul.f32 %v2657_v3, %v4395_v13  ;;  %v2693_v10 = vmul.f32 %v2661_v18, %v4401_v40  ;;  %v2694_v38 = vmul.f32 %v2665_v21, %v4420_v51 }
 0x684   :  { %v2695_v59 = vmul.f32 %v2669_v11, %v4425_v23  ;;  %v2696_v60 = vmul.f32 %v2665_v21, %v4422_v63  ;;  %v2697_v39 = vmul.f32 %v2669_v11, %v4428_v28  ;;  %v2698_v14 = vmul.f32 %v2673_v37, %v4434_v49  ;;  %v3408_v28 = vld [vmem:[#allocation2 + $0x28] sm:$0xff] }
 0x685   :  { %v2699_v50 = vmul.f32 %v2677_v19, %v4439_v57  ;;  %v2700_v62 = vmul.f32 %v2673_v37, %v4436_v61  ;;  %v2701_v27 = vmul.f32 %v2677_v19, %v4442_v15  ;;  %v2702_v13 = vadd.f32 %v3403_v5, %v2686_v35  ;;  %v3409_v57 = vld [vmem:[#allocation2 + $0x30] sm:$0xff]  ;;  %v3410_v61 = vld [vmem:[#allocation2 + $0x38] sm:$0xff]  ;;  %v3411_v15 = vld [vmem:[#allocation2 + $0x40] sm:$0xff] }
 0x686   :  { %v2703_v40 = vadd.f32 %v3404_v20, %v2687_v36  ;;  %v2704_v51 = vadd.f32 %v3405_v24, %v2688_v56  ;;  %v2705_v23 = vadd.f32 %v3406_v26, %v2689_v4  ;;  %v2706_v63 = vadd.f32 %v3407_v17, %v2690_v46 }
 0x687   :  { %v2707_v49 = vadd.f32 %v3408_v28, %v2691_v9  ;;  %v2708_v32 = vadd.f32 %v3409_v57, %v2692_v7  ;;  %v2709_v45 = vadd.f32 %v3410_v61, %v2693_v10  ;;  %v2710_v54 = vadd.f32 %v3411_v15, %v2694_v38  ;;  %2718 = vst [vmem:[#allocation13] sm:$0xff] %v2702_v13 }
 0x688   :  { %v2711_v31 = vadd.f32 %v3412_v41, %v2695_v59  ;;  %v2712_v43 = vadd.f32 %v3413_v6, %v2696_v60  ;;  %v2713_v1 = vadd.f32 %v3414_v34, %v2697_v39  ;;  %v2714_v29 = vadd.f32 %v3415_v48, %v2698_v14  ;;  %2719 = vst [vmem:[#allocation13 + $0x8] sm:$0xff] %v2703_v40 }
 0x689   :  { %2720 = vst [vmem:[#allocation13 + $0x10] sm:$0xff] %v2704_v51  ;;  %2721 = vst [vmem:[#allocation13 + $0x18] sm:$0xff] %v2705_v23  ;;  %v2715_v25 = vadd.f32 %v3416_v53, %v2699_v50  ;;  %v2716_v8 = vadd.f32 %v3417_v42, %v2700_v62  ;;  %v2717_v47 = vadd.f32 %v3418_v12, %v2701_v27 }
 0x68a   :  { %2722 = vst [vmem:[#allocation13 + $0x20] sm:$0xff] %v2706_v63  ;;  %2723 = vst [vmem:[#allocation13 + $0x28] sm:$0xff] %v2707_v49 }
 0x68b   :  { %2724 = vst [vmem:[#allocation13 + $0x30] sm:$0xff] %v2708_v32  ;;  %2725 = vst [vmem:[#allocation13 + $0x38] sm:$0xff] %v2709_v45 }
 0x68c   :  { %2726 = vst [vmem:[#allocation13 + $0x40] sm:$0xff] %v2710_v54  ;;  %2727 = vst [vmem:[#allocation13 + $0x48] sm:$0xff] %v2711_v31 }
 0x68d   :  { %2728 = vst [vmem:[#allocation13 + $0x50] sm:$0xff] %v2712_v43  ;;  %2729 = vst [vmem:[#allocation13 + $0x58] sm:$0xff] %v2713_v1 }
 0x68e   :  { %2730 = vst [vmem:[#allocation13 + $0x60] sm:$0xff] %v2714_v29  ;;  %2731 = vst [vmem:[#allocation13 + $0x68] sm:$0xff] %v2715_v25 }
 0x68f   :  { %2732 = vst [vmem:[#allocation13 + $0x70] sm:$0xff] %v2716_v8  ;;  %2733 = vst [vmem:[#allocation13 + $0x78] sm:$0xff] %v2717_v47 }
 0x690   :  { %3562 = shalt.err (!%p3559_p10)
}
 0x691   :  { %s4569_s23 = sld [smem:[#allocation21_spill]] }
 0x697   :  { %s3563_s0 = scalar_lea.hbm %s4569_s23, 2048 }
 0x698   :  { %p3564_p11 = scmp.ne.s32.totalorder %s4569_s23, %s3563_s0  ;;  %p3567_p12 = scmp.lt.u32.totalorder %s3563_s0, %s4569_s23 }
 0x69a   :  { %p3569_p13 = pnand %p3567_p12, %p3564_p11 }
 0x69c   :  { %3572 = shalt.err (!%p3569_p13)
}
 0x69d   :  { %2745 = dma.vmem_to_hbm [thread:$0]  %s2740_s16, 2048, %s4569_s23, [#allocation4], %s3588_s8, %s3588_s8, %s3589_s24  }
 0x69e   :  { %3581 = dma.done.wait [#allocation4], 2048  }
 0x69f   :  { %3582 = vsyncadd [#allocation4], 4294965248 }
 0x6a0   :  { %2749 = vsyncpa [#allocation3], 1 }
 0x6a1   :  { %2750 = vsyncpa [#allocation6], 1 }
 0x6a2   :  { %2751 = vsyncpa [#allocation9], 1 }
 0x6a3   :  { %2752 = vsyncpa [#allocation12], 1 }
 0x6a4   :  { %2753 = vsyncpa [#allocation4], 1 }

</bundles_post_ra>
